<compile_context>
chip_gen: v6e
topology: v6e:2x2x1
jax: 0.10.0
libtpu: 0.0.40
codegen_flags: <defaults>
</compile_context>

<pallas_src>
import jax
import jax.numpy as jnp
from jax.experimental import pallas as pl
from jax.experimental.pallas import tpu as pltpu

LANE = 128  # TPU lane width; final layer padded to this many output columns.


def _leaky_relu(x, slope=0.2):
    return jnp.where(x > 0, x, slope * x)


def _round_up(n, m):
    return ((n + m - 1) // m) * m


def discriminator_kernel(x_ref,
                         w1_ref, b1_ref,
                         w2_ref, b2_ref,
                         w3_ref, b3_ref,
                         w4_ref, b4_ref,
                         o_ref):
    # Layer 1: Linear(input_size -> 1024) + LeakyReLU(0.2)   [Dropout = identity]
    h = jnp.dot(x_ref[...], w1_ref[...], preferred_element_type=jnp.float32)
    h = _leaky_relu(h + b1_ref[...])                       # f32
    # Layer 2: Linear(1024 -> 512) + LeakyReLU(0.2)
    h = jnp.dot(h.astype(jnp.bfloat16), w2_ref[...],
                preferred_element_type=jnp.float32)
    h = _leaky_relu(h + b2_ref[...])
    # Layer 3: Linear(512 -> 256) + LeakyReLU(0.2)
    h = jnp.dot(h.astype(jnp.bfloat16), w3_ref[...],
                preferred_element_type=jnp.float32)
    h = _leaky_relu(h + b3_ref[...])
    # Layer 4: Linear(256 -> 1, lane-padded to 128) + Sigmoid
    logits = jnp.dot(h.astype(jnp.bfloat16), w4_ref[...],
                     preferred_element_type=jnp.float32) + b4_ref[...]
    o_ref[...] = jax.nn.sigmoid(logits)                    # EUP exp + divide


def vanilla_discriminator(x, params, *, block_b=None):
    """x: (B, input_size) float32. params: dict of w1..w4 (in,out) and b1..b4 (1,out)."""
    B, D = x.shape

    # Batch tile: fill the MXU M-dimension for large batches, keep padding
    # minimal for small demo batches (must stay a multiple of 8 sublanes).
    if block_b is None:
        if B >= 256:
            block_b = 256
        elif B >= 128:
            block_b = 128
        else:
            block_b = _round_up(B, 8)
    Bp = _round_up(B, block_b)
    if Bp != B:
        x = jnp.pad(x, ((0, Bp - B), (0, 0)))
    x = x.astype(jnp.bfloat16)

    # Weights -> bf16 (halves HBM traffic); biases stay f32.
    w1 = params["w1"].astype(jnp.bfloat16)
    w2 = params["w2"].astype(jnp.bfloat16)
    w3 = params["w3"].astype(jnp.bfloat16)
    b1 = params["b1"].astype(jnp.float32)
    b2 = params["b2"].astype(jnp.float32)
    b3 = params["b3"].astype(jnp.float32)
    # Final layer padded to lane width (zeros beyond column 0).
    w4 = jnp.pad(params["w4"], ((0, 0), (0, LANE - 1))).astype(jnp.bfloat16)
    b4 = jnp.pad(params["b4"], ((0, 0), (0, LANE - 1))).astype(jnp.float32)

    grid = (Bp // block_b,)
    const2 = lambda i: (0, 0)   # weight / bias blocks: resident across grid steps
    full = lambda arr: pl.BlockSpec(arr.shape, const2)

    flops = 2 * Bp * (D * 1024 + 1024 * 512 + 512 * 256 + 256 * LANE)
    bytes_accessed = (
        x.size * 2
        + (w1.size + w2.size + w3.size + w4.size) * 2
        + (b1.size + b2.size + b3.size + b4.size) * 4
        + Bp * LANE * 4
    )

    out = pl.pallas_call(
        discriminator_kernel,
        out_shape=jax.ShapeDtypeStruct((Bp, LANE), jnp.float32),
        grid_spec=pltpu.PrefetchScalarGridSpec(
            num_scalar_prefetch=0,
            grid=grid,
            in_specs=[
                pl.BlockSpec((block_b, D), lambda i: (i, 0)),   # x: batch-tiled
                full(w1), full(b1),
                full(w2), full(b2),
                full(w3), full(b3),
                full(w4), full(b4),
            ],
            out_specs=pl.BlockSpec((block_b, LANE), lambda i: (i, 0)),
        ),
        compiler_params=pltpu.CompilerParams(
            dimension_semantics=("parallel",),    # megacore batch sharding on v7x
            vmem_limit_bytes=16 << 20,
        ),
        cost_estimate=pl.CostEstimate(
            flops=flops,
            transcendentals=Bp * LANE,            # sigmoid exp per output element
            bytes_accessed=bytes_accessed,
        ),
    )(x, w1, b1, w2, b2, w3, b3, w4, b4)

    return out[:B, :1]


def init_params(input_size, key):
    """Deterministic parameter init (matches the shapes implied by __init__)."""
    sizes = [(input_size, 1024), (1024, 512), (512, 256), (256, 1)]
    params = {}
    for i, (fan_in, fan_out) in enumerate(sizes, start=1):
        key, kw, kb = jax.random.split(key, 3)
        bound = 1.0 / (fan_in ** 0.5)  # same scale as torch.nn.Linear default
        params[f"w{i}"] = jax.random.uniform(
            kw, (fan_in, fan_out), jnp.float32, -bound, bound)
        params[f"b{i}"] = jax.random.uniform(
            kb, (1, fan_out), jnp.float32, -bound, bound)
    return params


def reference_forward(x, params):
    """Pure-JAX reference with the same bf16-weight / f32-accumulate numerics."""
    h = x.astype(jnp.bfloat16)
    for i in (1, 2, 3):
        w = params[f"w{i}"].astype(jnp.bfloat16)
        h = jnp.dot(h, w, preferred_element_type=jnp.float32) + params[f"b{i}"]
        h = _leaky_relu(h).astype(jnp.bfloat16)
    w4 = params["w4"].astype(jnp.bfloat16)
    logits = jnp.dot(h, w4, preferred_element_type=jnp.float32) + params["b4"]
    return jax.nn.sigmoid(logits)


if __name__ == "__main__":
    key = jax.random.PRNGKey(0)
    input_size = 256
    params = init_params(input_size, key)

    # Small demo batch (single grid step, minimal padding).
    key, kx = jax.random.split(key)
    x_small = jax.random.normal(kx, (8, input_size), jnp.float32)
    out_small = jax.block_until_ready(vanilla_discriminator(x_small, params))
    ref_small = reference_forward(x_small, params)
    assert out_small.shape == (8, 1)
    assert jnp.allclose(out_small, ref_small, atol=1e-3, rtol=1e-3), \
        "small-batch mismatch vs JAX reference"

    # Multi-tile batch (exercises grid > 1, weight residency and batch padding).
    key, kx2 = jax.random.split(key)
    x_big = jax.random.normal(kx2, (384, input_size), jnp.float32)
    out_big = jax.block_until_ready(vanilla_discriminator(x_big, params))
    ref_big = reference_forward(x_big, params)
    assert out_big.shape == (384, 1)
    assert jnp.allclose(out_big, ref_big, atol=1e-3, rtol=1e-3), \
        "multi-tile mismatch vs JAX reference"

    print("KERNEL_OK")
</pallas_src>

<mosaic_0001>
module attributes {stable_mosaic.version = 11 : i64} {
  func.func @discriminator_kernel(%arg0: i32, %arg1: memref<8x256xbf16, #tpu.memory_space<vmem>>, %arg2: memref<256x1024xbf16, #tpu.memory_space<vmem>>, %arg3: memref<1x1024xf32, #tpu.memory_space<vmem>>, %arg4: memref<1024x512xbf16, #tpu.memory_space<vmem>>, %arg5: memref<1x512xf32, #tpu.memory_space<vmem>>, %arg6: memref<512x256xbf16, #tpu.memory_space<vmem>>, %arg7: memref<1x256xf32, #tpu.memory_space<vmem>>, %arg8: memref<256x128xbf16, #tpu.memory_space<vmem>>, %arg9: memref<1x128xf32, #tpu.memory_space<vmem>>, %arg10: memref<8x128xf32, #tpu.memory_space<vmem>>) attributes {dimension_semantics = [#tpu.dimension_semantics<parallel>], iteration_bounds = array<i64: 1>, scalar_prefetch = 0 : i64, scratch_operands = 0 : i64, tpu.core_type = #tpu.core_type<tc>, window_params = [{transform_indices = @transform_0, window_bounds = array<i64: 8, 256>}, {pipeline_mode = #tpu.pipeline_mode<synchronous>, transform_indices = @transform_1, window_bounds = array<i64: 256, 1024>}, {pipeline_mode = #tpu.pipeline_mode<synchronous>, transform_indices = @transform_2, window_bounds = array<i64: 1, 1024>}, {pipeline_mode = #tpu.pipeline_mode<synchronous>, transform_indices = @transform_3, window_bounds = array<i64: 1024, 512>}, {pipeline_mode = #tpu.pipeline_mode<synchronous>, transform_indices = @transform_4, window_bounds = array<i64: 1, 512>}, {pipeline_mode = #tpu.pipeline_mode<synchronous>, transform_indices = @transform_5, window_bounds = array<i64: 512, 256>}, {pipeline_mode = #tpu.pipeline_mode<synchronous>, transform_indices = @transform_6, window_bounds = array<i64: 1, 256>}, {pipeline_mode = #tpu.pipeline_mode<synchronous>, transform_indices = @transform_7, window_bounds = array<i64: 256, 128>}, {pipeline_mode = #tpu.pipeline_mode<synchronous>, transform_indices = @transform_8, window_bounds = array<i64: 1, 128>}, {transform_indices = @transform_9, window_bounds = array<i64: 8, 128>}]} {
    %c0 = arith.constant 0 : index
    %c0_0 = arith.constant 0 : index
    %0 = vector.load %arg1[%c0, %c0_0] : memref<8x256xbf16, #tpu.memory_space<vmem>>, vector<8x256xbf16>
    %c0_1 = arith.constant 0 : index
    %c0_2 = arith.constant 0 : index
    %1 = vector.load %arg2[%c0_1, %c0_2] : memref<256x1024xbf16, #tpu.memory_space<vmem>>, vector<256x1024xbf16>
    %cst = arith.constant dense<0.000000e+00> : vector<8x1024xf32>
    %2 = tpu.matmul %0, %1, %cst {dimension_numbers = #tpu.dot_dimension_numbers<[1], [0], [0], [1], [0, 0, 1, 1], [], []>} : vector<8x256xbf16>, vector<256x1024xbf16>, vector<8x1024xf32> -> vector<8x1024xf32>
    %c0_3 = arith.constant 0 : index
    %c0_4 = arith.constant 0 : index
    %3 = vector.load %arg3[%c0_3, %c0_4] : memref<1x1024xf32, #tpu.memory_space<vmem>>, vector<1x1024xf32>
    %4 = vector.broadcast %3 : vector<1x1024xf32> to vector<8x1024xf32>
    %5 = arith.addf %2, %4 : vector<8x1024xf32>
    %cst_5 = arith.constant 0.000000e+00 : f32
    %6 = vector.broadcast %cst_5 : f32 to vector<8x1024xf32>
    %7 = arith.cmpf ogt, %5, %6 : vector<8x1024xf32>
    %cst_6 = arith.constant 2.000000e-01 : f32
    %8 = vector.broadcast %cst_6 : f32 to vector<8x1024xf32>
    %9 = arith.mulf %8, %5 : vector<8x1024xf32>
    %10 = arith.select %7, %5, %9 : vector<8x1024xi1>, vector<8x1024xf32>
    %11 = arith.truncf %10 : vector<8x1024xf32> to vector<8x1024xbf16>
    %c0_7 = arith.constant 0 : index
    %c0_8 = arith.constant 0 : index
    %12 = vector.load %arg4[%c0_7, %c0_8] : memref<1024x512xbf16, #tpu.memory_space<vmem>>, vector<1024x512xbf16>
    %cst_9 = arith.constant dense<0.000000e+00> : vector<8x512xf32>
    %13 = tpu.matmul %11, %12, %cst_9 {dimension_numbers = #tpu.dot_dimension_numbers<[1], [0], [0], [1], [0, 0, 1, 1], [], []>} : vector<8x1024xbf16>, vector<1024x512xbf16>, vector<8x512xf32> -> vector<8x512xf32>
    %c0_10 = arith.constant 0 : index
    %c0_11 = arith.constant 0 : index
    %14 = vector.load %arg5[%c0_10, %c0_11] : memref<1x512xf32, #tpu.memory_space<vmem>>, vector<1x512xf32>
    %15 = vector.broadcast %14 : vector<1x512xf32> to vector<8x512xf32>
    %16 = arith.addf %13, %15 : vector<8x512xf32>
    %cst_12 = arith.constant 0.000000e+00 : f32
    %17 = vector.broadcast %cst_12 : f32 to vector<8x512xf32>
    %18 = arith.cmpf ogt, %16, %17 : vector<8x512xf32>
    %cst_13 = arith.constant 2.000000e-01 : f32
    %19 = vector.broadcast %cst_13 : f32 to vector<8x512xf32>
    %20 = arith.mulf %19, %16 : vector<8x512xf32>
    %21 = arith.select %18, %16, %20 : vector<8x512xi1>, vector<8x512xf32>
    %22 = arith.truncf %21 : vector<8x512xf32> to vector<8x512xbf16>
    %c0_14 = arith.constant 0 : index
    %c0_15 = arith.constant 0 : index
    %23 = vector.load %arg6[%c0_14, %c0_15] : memref<512x256xbf16, #tpu.memory_space<vmem>>, vector<512x256xbf16>
    %cst_16 = arith.constant dense<0.000000e+00> : vector<8x256xf32>
    %24 = tpu.matmul %22, %23, %cst_16 {dimension_numbers = #tpu.dot_dimension_numbers<[1], [0], [0], [1], [0, 0, 1, 1], [], []>} : vector<8x512xbf16>, vector<512x256xbf16>, vector<8x256xf32> -> vector<8x256xf32>
    %c0_17 = arith.constant 0 : index
    %c0_18 = arith.constant 0 : index
    %25 = vector.load %arg7[%c0_17, %c0_18] : memref<1x256xf32, #tpu.memory_space<vmem>>, vector<1x256xf32>
    %26 = vector.broadcast %25 : vector<1x256xf32> to vector<8x256xf32>
    %27 = arith.addf %24, %26 : vector<8x256xf32>
    %cst_19 = arith.constant 0.000000e+00 : f32
    %28 = vector.broadcast %cst_19 : f32 to vector<8x256xf32>
    %29 = arith.cmpf ogt, %27, %28 : vector<8x256xf32>
    %cst_20 = arith.constant 2.000000e-01 : f32
    %30 = vector.broadcast %cst_20 : f32 to vector<8x256xf32>
    %31 = arith.mulf %30, %27 : vector<8x256xf32>
    %32 = arith.select %29, %27, %31 : vector<8x256xi1>, vector<8x256xf32>
    %33 = arith.truncf %32 : vector<8x256xf32> to vector<8x256xbf16>
    %c0_21 = arith.constant 0 : index
    %c0_22 = arith.constant 0 : index
    %34 = vector.load %arg8[%c0_21, %c0_22] : memref<256x128xbf16, #tpu.memory_space<vmem>>, vector<256x128xbf16>
    %cst_23 = arith.constant dense<0.000000e+00> : vector<8x128xf32>
    %35 = tpu.matmul %33, %34, %cst_23 {dimension_numbers = #tpu.dot_dimension_numbers<[1], [0], [0], [1], [0, 0, 1, 1], [], []>} : vector<8x256xbf16>, vector<256x128xbf16>, vector<8x128xf32> -> vector<8x128xf32>
    %c0_24 = arith.constant 0 : index
    %c0_25 = arith.constant 0 : index
    %36 = vector.load %arg9[%c0_24, %c0_25] : memref<1x128xf32, #tpu.memory_space<vmem>>, vector<1x128xf32>
    %37 = vector.broadcast %36 : vector<1x128xf32> to vector<8x128xf32>
    %38 = arith.addf %35, %37 : vector<8x128xf32>
    %39 = arith.negf %38 : vector<8x128xf32>
    %40 = math.exp %39 : vector<8x128xf32>
    %cst_26 = arith.constant 1.000000e+00 : f32
    %41 = vector.broadcast %cst_26 : f32 to vector<8x128xf32>
    %42 = arith.addf %41, %40 : vector<8x128xf32>
    %43 = arith.divf %41, %42 : vector<8x128xf32>
    %c0_27 = arith.constant 0 : index
    %c0_28 = arith.constant 0 : index
    %44 = vector.load %arg10[%c0_27, %c0_28] : memref<8x128xf32, #tpu.memory_space<vmem>>, vector<8x128xf32>
    tpu.vector_store %arg10[%c0_27, %c0_28], %43 {strides = array<i32>} : memref<8x128xf32, #tpu.memory_space<vmem>>, vector<8x128xf32>,
    return
  }
  func.func @transform_0(%arg0: i32) -> (i32, i32) {
    %c0_i32 = arith.constant 0 : i32
    %c0_i32_0 = arith.constant 0 : i32
    return %arg0, %c0_i32 : i32, i32
  }
  func.func @transform_1(%arg0: i32) -> (i32, i32) {
    %c0_i32 = arith.constant 0 : i32
    %c0_i32_0 = arith.constant 0 : i32
    %c0_i32_1 = arith.constant 0 : i32
    return %c0_i32, %c0_i32_0 : i32, i32
  }
  func.func @transform_2(%arg0: i32) -> (i32, i32) {
    %c0_i32 = arith.constant 0 : i32
    %c0_i32_0 = arith.constant 0 : i32
    %c0_i32_1 = arith.constant 0 : i32
    return %c0_i32, %c0_i32_0 : i32, i32
  }
  func.func @transform_3(%arg0: i32) -> (i32, i32) {
    %c0_i32 = arith.constant 0 : i32
    %c0_i32_0 = arith.constant 0 : i32
    %c0_i32_1 = arith.constant 0 : i32
    return %c0_i32, %c0_i32_0 : i32, i32
  }
  func.func @transform_4(%arg0: i32) -> (i32, i32) {
    %c0_i32 = arith.constant 0 : i32
    %c0_i32_0 = arith.constant 0 : i32
    %c0_i32_1 = arith.constant 0 : i32
    return %c0_i32, %c0_i32_0 : i32, i32
  }
  func.func @transform_5(%arg0: i32) -> (i32, i32) {
    %c0_i32 = arith.constant 0 : i32
    %c0_i32_0 = arith.constant 0 : i32
    %c0_i32_1 = arith.constant 0 : i32
    return %c0_i32, %c0_i32_0 : i32, i32
  }
  func.func @transform_6(%arg0: i32) -> (i32, i32) {
    %c0_i32 = arith.constant 0 : i32
    %c0_i32_0 = arith.constant 0 : i32
    %c0_i32_1 = arith.constant 0 : i32
    return %c0_i32, %c0_i32_0 : i32, i32
  }
  func.func @transform_7(%arg0: i32) -> (i32, i32) {
    %c0_i32 = arith.constant 0 : i32
    %c0_i32_0 = arith.constant 0 : i32
    %c0_i32_1 = arith.constant 0 : i32
    return %c0_i32, %c0_i32_0 : i32, i32
  }
  func.func @transform_8(%arg0: i32) -> (i32, i32) {
    %c0_i32 = arith.constant 0 : i32
    %c0_i32_0 = arith.constant 0 : i32
    %c0_i32_1 = arith.constant 0 : i32
    return %c0_i32, %c0_i32_0 : i32, i32
  }
  func.func @transform_9(%arg0: i32) -> (i32, i32) {
    %c0_i32 = arith.constant 0 : i32
    %c0_i32_0 = arith.constant 0 : i32
    return %arg0, %c0_i32 : i32, i32
  }
}

</mosaic_0001>

<bundles_post_ra>
// kernel: tpu_custom_call.1
= control target key start
LH: loop header
LB: loop body
LE: loop exit
PB: predicated region body
PF: predicated region fallthrough
CT: control target
= control target key end

     0   :  { %14 = vsyncpa [#allocation3], 0  ;;  %s5074_s0 = inlined_call_operand.hbm [shape: bf16[8,256], index: 0, kind: input, shape index: {}]   ;;  %s5075_s1 = inlined_call_operand.hbm [shape: bf16[256,1024], index: 1, kind: input, shape index: {}]   ;;  %s5076_s2 = inlined_call_operand.hbm [shape: f32[1,1024], index: 2, kind: input, shape index: {}]   ;;  %s5077_s3 = inlined_call_operand.hbm [shape: bf16[1024,512], index: 3, kind: input, shape index: {}]   ;;  %s5078_s4 = inlined_call_operand.vmem [shape: f32[1,512], index: 4, kind: input, shape index: {}]   ;;  %s5079_s5 = inlined_call_operand.hbm [shape: bf16[512,256], index: 5, kind: input, shape index: {}]   ;;  %s5080_s6 = inlined_call_operand.vmem [shape: f32[1,256], index: 6, kind: input, shape index: {}]   ;;  %s5081_s7 = inlined_call_operand.hbm [shape: bf16[256,128], index: 7, kind: input, shape index: {}]   ;;  %s5082_s8 = inlined_call_operand.vmem [shape: f32[1,128], index: 8, kind: input, shape index: {}]   ;;  %s5083_s9 = inlined_call_operand.hbm [shape: f32[8,128], index: 9, kind: output, shape index: {}]  }
   0x1   :  { %15 = vsyncpa [#allocation6], 0 }
   0x2   :  { %16 = vsyncpa [#allocation9], 0 }
   0x3   :  { %17 = vsyncpa [#allocation12], 0 }
   0x4   :  { %18 = vsyncpa [#allocation4], 0  ;;  %s4871_s30 = smov [#allocation5]  }
   0x5   :  { %s34_s10 = sshll.u32 %s4871_s30, 4  ;;  %s35_s10 = int_to_ptr.vmem [resolvable:$true] %s34_s10 }
   0x6   :  { %s4729_s11 = scalar_lea.vmem %s35_s10, 16384  ;;  %p4734_p1 = scmp.lt.s32.totalorder %s35_s10, %s35_s10 }
   0x7   :  { %p4730_p0 = scmp.ne.s32.totalorder %s35_s10, %s4729_s11  ;;  %p4735_p2 = scmp.lt.s32.totalorder %s4729_s11, %s4729_s11 }
   0x9   :  { %p4736_p3 = por %p4735_p2, %p4734_p1 }
   0xb   :  { %p4737_p4 = pnand %p4736_p3, %p4730_p0 }
   0xd   :  { %4740 = shalt.err (!%p4737_p4)
}
   0xe   :  { %s4872_s12 = smov 512   ;;  %s4873_s13 = smov 32  }
   0xf   :  { %40 = dma.hbm_to_vmem [thread:$0]  %s5075_s1, 16384, %s35_s10, [#allocation6], %s4872_s12, %s4872_s12, %s4873_s13  }
  0x10   :  { %s4874_s16 = smov [#allocation8]  }
  0x11   :  { %s56_s17 = sshll.u32 %s4874_s16, 4  ;;  %s57_s17 = int_to_ptr.vmem [resolvable:$true] %s56_s17 }
  0x12   :  { %s4749_s18 = scalar_lea.vmem %s57_s17, 32768  ;;  %p4754_p6 = scmp.lt.s32.totalorder %s57_s17, %s57_s17 }
  0x13   :  { %p4750_p5 = scmp.ne.s32.totalorder %s57_s17, %s4749_s18  ;;  %p4755_p7 = scmp.lt.s32.totalorder %s4749_s18, %s4749_s18 }
  0x15   :  { %p4756_p8 = por %p4755_p7, %p4754_p6 }
  0x17   :  { %p4757_p9 = pnand %p4756_p8, %p4750_p5 }
  0x19   :  { %4760 = shalt.err (!%p4757_p9)
}
  0x1a   :  { %s4875_s19 = smov 256   ;;  %s4876_s20 = smov 16  }
  0x1b   :  { %62 = dma.hbm_to_vmem [thread:$0]  %s5077_s3, 32768, %s57_s17, [#allocation9], %s4875_s19, %s4875_s19, %s4876_s20  }
  0x1c   :  { %s4877_s23 = smov [#allocation2]   ;;  %s4878_s25 = smov [#allocation7]  }
  0x1d   :  { %s25_s24 = sshll.u32 %s4877_s23, 4  ;;  %s47_s1 = sshll.u32 %s4878_s25, 4  ;;  %s26_s24 = int_to_ptr.vmem [resolvable:$true] %s25_s24  ;;  %s48_s1 = int_to_ptr.vmem [resolvable:$true] %s47_s1 }
  0x1e   :  { %s4769_s26 = scalar_lea.vmem %s26_s24, 128  ;;  %p4774_p11 = scmp.lt.s32.totalorder %s26_s24, %s26_s24 }
  0x1f   :  { %p4770_p10 = scmp.ne.s32.totalorder %s26_s24, %s4769_s26  ;;  %p4775_p12 = scmp.lt.s32.totalorder %s4769_s26, %s4769_s26 }
  0x21   :  { %p4776_p13 = por %p4775_p12, %p4774_p11 }
  0x23   :  { %p4777_p0 = pnand %p4776_p13, %p4770_p10 }
  0x25   :  { %4780 = shalt.err (!%p4777_p0)
}
  0x26   :  { %28 = dma.hbm_to_vmem [thread:$0]  %s5074_s0, 128, %s26_s24, [#allocation3]  }
  0x27   :  { %s4789_s29 = scalar_lea.vmem %s48_s1, 128  ;;  %p4794_p2 = scmp.lt.s32.totalorder %s48_s1, %s48_s1 }
  0x28   :  { %p4790_p1 = scmp.ne.s32.totalorder %s48_s1, %s4789_s29  ;;  %p4795_p3 = scmp.lt.s32.totalorder %s4789_s29, %s4789_s29 }
  0x2a   :  { %p4796_p4 = por %p4795_p3, %p4794_p2 }
  0x2c   :  { %p4797_p5 = pnand %p4796_p4, %p4790_p1 }
  0x2e   :  { %4800 = shalt.err (!%p4797_p5)
}
  0x2f   :  { %50 = dma.hbm_to_vmem [thread:$0]  %s5076_s2, 128, %s48_s1, [#allocation6]  }
  0x30   :  { %s4879_s10 = smov [#allocation10]  }
  0x31   :  { %s70_s11 = sshll.u32 %s4879_s10, 4  ;;  %s71_s11 = int_to_ptr.vmem [resolvable:$true] %s70_s11 }
  0x32   :  { %s4809_s12 = scalar_lea.vmem %s71_s11, 8192  ;;  %p4814_p7 = scmp.lt.s32.totalorder %s71_s11, %s71_s11 }
  0x33   :  { %p4810_p6 = scmp.ne.s32.totalorder %s71_s11, %s4809_s12  ;;  %p4815_p8 = scmp.lt.s32.totalorder %s4809_s12, %s4809_s12 }
  0x35   :  { %p4816_p9 = por %p4815_p8, %p4814_p7 }
  0x37   :  { %p4817_p10 = pnand %p4816_p9, %p4810_p6 }
  0x39   :  { %4820 = shalt.err (!%p4817_p10)
}
  0x3a   :  { %s4880_s0 = smov 128   ;;  %s4881_s13 = smov 8  }
  0x3b   :  { %76 = dma.hbm_to_vmem [thread:$0]  %s5079_s5, 8192, %s71_s11, [#allocation9], %s4880_s0, %s4880_s0, %s4881_s13  }
  0x3c   :  { %s4882_s16 = smov [#allocation11]  }
  0x3d   :  { %s84_s17 = sshll.u32 %s4882_s16, 4  ;;  %s85_s17 = int_to_ptr.vmem [resolvable:$true] %s84_s17 }
  0x3e   :  { %s4829_s2 = scalar_lea.vmem %s85_s17, 2048  ;;  %p4834_p12 = scmp.lt.s32.totalorder %s85_s17, %s85_s17 }
  0x3f   :  { %p4830_p11 = scmp.ne.s32.totalorder %s85_s17, %s4829_s2  ;;  %p4835_p13 = scmp.lt.s32.totalorder %s4829_s2, %s4829_s2 }
  0x41   :  { %p4836_p0 = por %p4835_p13, %p4834_p12 }
  0x43   :  { %p4837_p1 = pnand %p4836_p0, %p4830_p11 }
  0x45   :  { %4840 = shalt.err (!%p4837_p1)
}
  0x46   :  { %s4883_s18 = smov 64   ;;  %s4884_s19 = smov 4  }
  0x47   :  { %90 = dma.hbm_to_vmem [thread:$0]  %s5081_s7, 2048, %s85_s17, [#allocation12], %s4883_s18, %s4883_s18, %s4884_s19  }
  0x48   :  { %4861 = dma.done.wait [#allocation3], 128  }
  0x49   :  { %4862 = vsyncadd [#allocation3], 4294967168 }
  0x4a   :  { %4863 = dma.done.wait [#allocation6], 16512  }
  0x4b   :  { %4864 = vsyncadd [#allocation6], 4294950784 }
  0x4c   :  { %4865 = dma.done.wait [#allocation9], 40960  }
  0x4d   :  { %4866 = vsyncadd [#allocation9], 4294926336 }
  0x4e   :  { %4867 = dma.done.wait [#allocation12], 2048  }
  0x4f   :  { %4868 = vsyncadd [#allocation12], 4294965248  ;;  %v169_v0 = vld [vmem:[#allocation5 + $0x1c0] sm:$0xff]  ;;  %v170_v2 = vld [vmem:[#allocation5 + $0x1c8] sm:$0xff]  ;;  %s4885_s24 = smov [#allocation13]  }
  0x50   :  { %v173_v1 = vld [vmem:[#allocation5 + $0x1e0] sm:$0xff]  ;;  %v174_v4 = vld [vmem:[#allocation5 + $0x1e8] sm:$0xff]  ;;  %v4954_v53 = vld [vmem:[#allocation2] sm:$0xff]  ;;  %s3702_s25 = sshll.u32 %s4885_s24, 4  ;;  %s3703_s25 = int_to_ptr.vmem [resolvable:$true] %s3702_s25 }
  0x51   :  { %v3773_v3 = vcombine.high %v169_v0, %v173_v1  ;;  %v3772_v5 = vcombine.low %v169_v0, %v173_v1  ;;  %v161_v6 = vld [vmem:[#allocation5 + $0x180] sm:$0xff]  ;;  %v3775_v8 = vcombine.high %v170_v2, %v174_v4  ;;  %v3774_v9 = vcombine.low %v170_v2, %v174_v4  ;;  %v162_v11 = vld [vmem:[#allocation5 + $0x188] sm:$0xff]  ;;  %s4841_s1 = scalar_lea.vmem %s3703_s25, 128  ;;  %p4846_p3 = scmp.lt.s32.totalorder %s3703_s25, %s3703_s25 }
  0x52   :  { %v165_v7 = vld [vmem:[#allocation5 + $0x1a0] sm:$0xff]  ;;  %v166_v12 = vld [vmem:[#allocation5 + $0x1a8] sm:$0xff]  ;;  %v4958_v57 = vcombine.high %v4954_v53, %v4954_v53  ;;  %p4842_p2 = scmp.ne.s32.totalorder %s3703_s25, %s4841_s1  ;;  %p4847_p4 = scmp.lt.s32.totalorder %s4841_s1, %s4841_s1 }
  0x53   :  { %v3765_v10 = vcombine.high %v161_v6, %v165_v7  ;;  %v153_v13 = vld [vmem:[#allocation5 + $0x140] sm:$0xff]  ;;  %930 = vmatprep.subr.bf16.mxu0 %v3773_v3  ;;  %v3767_v14 = vcombine.high %v162_v11, %v166_v12  ;;  %v154_v16 = vld [vmem:[#allocation5 + $0x148] sm:$0xff]  ;;  %971 = vmatprep.subr.bf16.mxu1 %v3775_v8  ;;  %v3764_v18 = vcombine.low %v161_v6, %v165_v7 }
  0x54   :  { %v157_v15 = vld [vmem:[#allocation5 + $0x160] sm:$0xff]  ;;  %v158_v17 = vld [vmem:[#allocation5 + $0x168] sm:$0xff]  ;;  %931 = vmatpush1.bf16.msra.mxu0 %v3772_v5  ;;  %972 = vmatpush1.bf16.msra.mxu1 %v3774_v9  ;;  %v3766_v19 = vcombine.low %v162_v11, %v166_v12  ;;  %p4848_p5 = por %p4847_p4, %p4846_p3 }
  0x55   :  { %932 = vmatprep.subr.bf16.mxu0 %v3765_v10  ;;  %v3757_v20 = vcombine.high %v153_v13, %v157_v15  ;;  %973 = vmatprep.subr.bf16.mxu1 %v3767_v14  ;;  %v3759_v21 = vcombine.high %v154_v16, %v158_v17  ;;  %v145_v22 = vld [vmem:[#allocation5 + $0x100] sm:$0xff]  ;;  %v146_v24 = vld [vmem:[#allocation5 + $0x108] sm:$0xff]  ;;  %v3756_v26 = vcombine.low %v153_v13, %v157_v15 }
  0x56   :  { %v149_v23 = vld [vmem:[#allocation5 + $0x120] sm:$0xff]  ;;  %v150_v25 = vld [vmem:[#allocation5 + $0x128] sm:$0xff]  ;;  %v3758_v27 = vcombine.low %v154_v16, %v158_v17  ;;  %962 = vmatprep.mubr.bf16.mxu0 %v4958_v57  ;;  %1003 = vmatprep.mubr.bf16.mxu1 %v4958_v57  ;;  %p4849_p6 = pnand %p4848_p5, %p4842_p2 }
  0x57   :  { %v3749_v28 = vcombine.high %v145_v22, %v149_v23  ;;  %v3751_v29 = vcombine.high %v146_v24, %v150_v25  ;;  %v137_v30 = vld [vmem:[#allocation5 + $0xc0] sm:$0xff]  ;;  %v138_v32 = vld [vmem:[#allocation5 + $0xc8] sm:$0xff]  ;;  %v3748_v34 = vcombine.low %v145_v22, %v149_v23  ;;  %v3750_v35 = vcombine.low %v146_v24, %v150_v25 }
  0x58   :  { %933 = vmatpush1.bf16.msra.mxu0 %v3764_v18  ;;  %974 = vmatpush1.bf16.msra.mxu1 %v3766_v19  ;;  %v141_v31 = vld [vmem:[#allocation5 + $0xe0] sm:$0xff]  ;;  %v142_v33 = vld [vmem:[#allocation5 + $0xe8] sm:$0xff] }
  0x59   :  { %934 = vmatprep.subr.bf16.mxu0 %v3757_v20  ;;  %975 = vmatprep.subr.bf16.mxu1 %v3759_v21  ;;  %v3741_v36 = vcombine.high %v137_v30, %v141_v31  ;;  %v3743_v37 = vcombine.high %v138_v32, %v142_v33  ;;  %v129_v38 = vld [vmem:[#allocation5 + $0x80] sm:$0xff]  ;;  %v130_v40 = vld [vmem:[#allocation5 + $0x88] sm:$0xff]  ;;  %v3740_v42 = vcombine.low %v137_v30, %v141_v31 }
  0x5a   :  { %v133_v39 = vld [vmem:[#allocation5 + $0xa0] sm:$0xff]  ;;  %v134_v41 = vld [vmem:[#allocation5 + $0xa8] sm:$0xff]  ;;  %v3742_v43 = vcombine.low %v138_v32, %v142_v33 }
  0x5b   :  { %v3733_v44 = vcombine.high %v129_v38, %v133_v39  ;;  %v3735_v45 = vcombine.high %v130_v40, %v134_v41  ;;  %v121_v46 = vld [vmem:[#allocation5 + $0x40] sm:$0xff]  ;;  %v122_v48 = vld [vmem:[#allocation5 + $0x48] sm:$0xff]  ;;  %v3732_v50 = vcombine.low %v129_v38, %v133_v39  ;;  %v3734_v51 = vcombine.low %v130_v40, %v134_v41 }
  0x5c   :  { %935 = vmatpush1.bf16.msra.mxu0 %v3756_v26  ;;  %976 = vmatpush1.bf16.msra.mxu1 %v3758_v27  ;;  %v125_v47 = vld [vmem:[#allocation5 + $0x60] sm:$0xff]  ;;  %v126_v49 = vld [vmem:[#allocation5 + $0x68] sm:$0xff] }
  0x5d   :  { %936 = vmatprep.subr.bf16.mxu0 %v3749_v28  ;;  %977 = vmatprep.subr.bf16.mxu1 %v3751_v29  ;;  %v3725_v52 = vcombine.high %v121_v46, %v125_v47  ;;  %v3727_v54 = vcombine.high %v122_v48, %v126_v49  ;;  %v113_v55 = vld [vmem:[#allocation5] sm:$0xff]  ;;  %v114_v58 = vld [vmem:[#allocation5 + $0x8] sm:$0xff]  ;;  %v3724_v60 = vcombine.low %v121_v46, %v125_v47 }
  0x5e   :  { %v117_v56 = vld [vmem:[#allocation5 + $0x20] sm:$0xff]  ;;  %v118_v59 = vld [vmem:[#allocation5 + $0x28] sm:$0xff]  ;;  %v3726_v61 = vcombine.low %v122_v48, %v126_v49 }
  0x5f   :  { %v3717_v62 = vcombine.high %v113_v55, %v117_v56  ;;  %v3719_v63 = vcombine.high %v114_v58, %v118_v59  ;;  %v233_v0 = vld [vmem:[#allocation5 + $0x3c0] sm:$0xff]  ;;  %v234_v2 = vld [vmem:[#allocation5 + $0x3c8] sm:$0xff]  ;;  %v3716_v4 = vcombine.low %v113_v55, %v117_v56  ;;  %v3718_v5 = vcombine.low %v114_v58, %v118_v59 }
  0x60   :  { %937 = vmatpush1.bf16.msra.mxu0 %v3748_v34  ;;  %978 = vmatpush1.bf16.msra.mxu1 %v3750_v35  ;;  %v237_v1 = vld [vmem:[#allocation5 + $0x3e0] sm:$0xff]  ;;  %v238_v3 = vld [vmem:[#allocation5 + $0x3e8] sm:$0xff] }
  0x61   :  { %938 = vmatprep.subr.bf16.mxu0 %v3741_v36  ;;  %979 = vmatprep.subr.bf16.mxu1 %v3743_v37  ;;  %v3837_v6 = vcombine.high %v233_v0, %v237_v1  ;;  %v3839_v7 = vcombine.high %v234_v2, %v238_v3  ;;  %v225_v8 = vld [vmem:[#allocation5 + $0x380] sm:$0xff]  ;;  %v226_v10 = vld [vmem:[#allocation5 + $0x388] sm:$0xff]  ;;  %v3836_v12 = vcombine.low %v233_v0, %v237_v1  ;;  %v171_v1 = vld [vmem:[#allocation5 + $0x1d0] sm:$0xff] }
  0x62   :  { %v229_v9 = vld [vmem:[#allocation5 + $0x3a0] sm:$0xff]  ;;  %v230_v11 = vld [vmem:[#allocation5 + $0x3a8] sm:$0xff]  ;;  %v3838_v13 = vcombine.low %v234_v2, %v238_v3  ;;  %v175_v3 = vld [vmem:[#allocation5 + $0x1f0] sm:$0xff] }
  0x63   :  { %v3829_v14 = vcombine.high %v225_v8, %v229_v9  ;;  %v3831_v15 = vcombine.high %v226_v10, %v230_v11  ;;  %v217_v16 = vld [vmem:[#allocation5 + $0x340] sm:$0xff]  ;;  %v218_v18 = vld [vmem:[#allocation5 + $0x348] sm:$0xff]  ;;  %v3828_v20 = vcombine.low %v225_v8, %v229_v9  ;;  %v3830_v21 = vcombine.low %v226_v10, %v230_v11  ;;  %v163_v9 = vld [vmem:[#allocation5 + $0x190] sm:$0xff] }
  0x64   :  { %939 = vmatpush1.bf16.msra.mxu0 %v3740_v42  ;;  %980 = vmatpush1.bf16.msra.mxu1 %v3742_v43  ;;  %v221_v17 = vld [vmem:[#allocation5 + $0x360] sm:$0xff]  ;;  %v222_v19 = vld [vmem:[#allocation5 + $0x368] sm:$0xff]  ;;  %v3777_v8 = vcombine.high %v171_v1, %v175_v3  ;;  %v167_v11 = vld [vmem:[#allocation5 + $0x1b0] sm:$0xff] }
  0x65   :  { %940 = vmatprep.subr.bf16.mxu0 %v3733_v44  ;;  %981 = vmatprep.subr.bf16.mxu1 %v3735_v45  ;;  %v3821_v22 = vcombine.high %v217_v16, %v221_v17  ;;  %v3823_v23 = vcombine.high %v218_v18, %v222_v19  ;;  %v209_v24 = vld [vmem:[#allocation5 + $0x300] sm:$0xff]  ;;  %v210_v26 = vld [vmem:[#allocation5 + $0x308] sm:$0xff]  ;;  %v3820_v28 = vcombine.low %v217_v16, %v221_v17 }
  0x66   :  { %v213_v25 = vld [vmem:[#allocation5 + $0x320] sm:$0xff]  ;;  %v214_v27 = vld [vmem:[#allocation5 + $0x328] sm:$0xff]  ;;  %v3822_v29 = vcombine.low %v218_v18, %v222_v19  ;;  %v3769_v17 = vcombine.high %v163_v9, %v167_v11  ;;  %v155_v18 = vld [vmem:[#allocation5 + $0x150] sm:$0xff] }
  0x67   :  { %v3813_v30 = vcombine.high %v209_v24, %v213_v25  ;;  %v3815_v31 = vcombine.high %v210_v26, %v214_v27  ;;  %v201_v32 = vld [vmem:[#allocation5 + $0x2c0] sm:$0xff]  ;;  %v202_v34 = vld [vmem:[#allocation5 + $0x2c8] sm:$0xff]  ;;  %v3812_v36 = vcombine.low %v209_v24, %v213_v25  ;;  %v3814_v37 = vcombine.low %v210_v26, %v214_v27  ;;  %v147_v25 = vld [vmem:[#allocation5 + $0x110] sm:$0xff] }
  0x68   :  { %941 = vmatpush1.bf16.msra.mxu0 %v3732_v50  ;;  %982 = vmatpush1.bf16.msra.mxu1 %v3734_v51  ;;  %v205_v33 = vld [vmem:[#allocation5 + $0x2e0] sm:$0xff]  ;;  %v206_v35 = vld [vmem:[#allocation5 + $0x2e8] sm:$0xff]  ;;  %v151_v27 = vld [vmem:[#allocation5 + $0x130] sm:$0xff] }
  0x69   :  { %942 = vmatprep.subr.bf16.mxu0 %v3725_v52  ;;  %983 = vmatprep.subr.bf16.mxu1 %v3727_v54  ;;  %v3805_v38 = vcombine.high %v201_v32, %v205_v33  ;;  %v193_v39 = vld [vmem:[#allocation5 + $0x280] sm:$0xff]  ;;  %v3807_v40 = vcombine.high %v202_v34, %v206_v35  ;;  %v194_v42 = vld [vmem:[#allocation5 + $0x288] sm:$0xff]  ;;  %v3804_v44 = vcombine.low %v201_v32, %v205_v33  ;;  %v139_v33 = vld [vmem:[#allocation5 + $0xd0] sm:$0xff] }
  0x6a   :  { %v197_v41 = vld [vmem:[#allocation5 + $0x2a0] sm:$0xff]  ;;  %v198_v43 = vld [vmem:[#allocation5 + $0x2a8] sm:$0xff]  ;;  %v3806_v45 = vcombine.low %v202_v34, %v206_v35  ;;  %v3753_v32 = vcombine.high %v147_v25, %v151_v27  ;;  %v143_v35 = vld [vmem:[#allocation5 + $0xf0] sm:$0xff] }
  0x6b   :  { %v3797_v46 = vcombine.high %v193_v39, %v197_v41  ;;  %v185_v47 = vld [vmem:[#allocation5 + $0x240] sm:$0xff]  ;;  %v3799_v48 = vcombine.high %v194_v42, %v198_v43  ;;  %v186_v50 = vld [vmem:[#allocation5 + $0x248] sm:$0xff]  ;;  %v3796_v52 = vcombine.low %v193_v39, %v197_v41  ;;  %v3798_v54 = vcombine.low %v194_v42, %v198_v43  ;;  %v131_v41 = vld [vmem:[#allocation5 + $0x90] sm:$0xff] }
  0x6c   :  { %943 = vmatpush1.bf16.msra.mxu0 %v3724_v60  ;;  %984 = vmatpush1.bf16.msra.mxu1 %v3726_v61  ;;  %v189_v49 = vld [vmem:[#allocation5 + $0x260] sm:$0xff]  ;;  %v190_v51 = vld [vmem:[#allocation5 + $0x268] sm:$0xff]  ;;  %v135_v42 = vld [vmem:[#allocation5 + $0xb0] sm:$0xff] }
  0x6d   :  { %944 = vmatprep.subr.bf16.mxu0 %v3717_v62  ;;  %985 = vmatprep.subr.bf16.mxu1 %v3719_v63  ;;  %v3789_v55 = vcombine.high %v185_v47, %v189_v49  ;;  %v177_v56 = vld [vmem:[#allocation5 + $0x200] sm:$0xff]  ;;  %v3791_v58 = vcombine.high %v186_v50, %v190_v51  ;;  %v178_v60 = vld [vmem:[#allocation5 + $0x208] sm:$0xff]  ;;  %v3788_v62 = vcombine.low %v185_v47, %v189_v49  ;;  %v132_v43 = vld [vmem:[#allocation5 + $0x98] sm:$0xff] }
  0x6e   :  { %v181_v59 = vld [vmem:[#allocation5 + $0x220] sm:$0xff]  ;;  %v182_v61 = vld [vmem:[#allocation5 + $0x228] sm:$0xff]  ;;  %v3790_v63 = vcombine.low %v186_v50, %v190_v51  ;;  %v127_v47 = vld [vmem:[#allocation5 + $0x70] sm:$0xff]  ;;  %v3737_v49 = vcombine.high %v131_v41, %v135_v42 }
  0x6f   :  { %v3781_v0 = vcombine.high %v177_v56, %v181_v59  ;;  %v3783_v2 = vcombine.high %v178_v60, %v182_v61  ;;  %v124_v50 = vld [vmem:[#allocation5 + $0x58] sm:$0xff] }
  0x70   :  { %945 = vmatpush1.bf16.msra.mxu0 %v3716_v4  ;;  %986 = vmatpush1.bf16.msra.mxu1 %v3718_v5  ;;  %v172_v4 = vld [vmem:[#allocation5 + $0x1d8] sm:$0xff] }
  0x71   :  { %946 = vmatprep.subr.bf16.mxu0 %v3837_v6  ;;  %987 = vmatprep.subr.bf16.mxu1 %v3839_v7  ;;  %v176_v5 = vld [vmem:[#allocation5 + $0x1f8] sm:$0xff]  ;;  %v3780_v6 = vcombine.low %v177_v56, %v181_v59  ;;  %v3782_v7 = vcombine.low %v178_v60, %v182_v61  ;;  %v119_v56 = vld [vmem:[#allocation5 + $0x30] sm:$0xff] }
  0x72   :  { %v3779_v10 = vcombine.high %v172_v4, %v176_v5  ;;  %v3778_v16 = vcombine.low %v172_v4, %v176_v5  ;;  %v128_v51 = vld [vmem:[#allocation5 + $0x78] sm:$0xff] }
  0x73   :  { %v116_v60 = vld [vmem:[#allocation5 + $0x18] sm:$0xff] }
  0x74   :  { %947 = vmatpush2.bf16.msra.mxu0 %v3836_v12  ;;  %988 = vmatpush2.bf16.msra.mxu1 %v3838_v13  ;;  %v164_v12 = vld [vmem:[#allocation5 + $0x198] sm:$0xff]  ;;  %v4964_v13 = vcombine.low %v4954_v53, %v4954_v53  ;;  %v3768_v53 = vcombine.low %v163_v9, %v167_v11  ;;  %v231_v9 = vld [vmem:[#allocation5 + $0x3b0] sm:$0xff] }
  0x75   :  { %948 = vmatprep.subr.bf16.mxu0 %v3829_v14  ;;  %989 = vmatprep.subr.bf16.mxu1 %v3831_v15  ;;  %v168_v14 = vld [vmem:[#allocation5 + $0x1b8] sm:$0xff]  ;;  %v3776_v15 = vcombine.low %v171_v1, %v175_v3  ;;  %v239_v1 = vld [vmem:[#allocation5 + $0x3f0] sm:$0xff] }
  0x76   :  { %v3771_v19 = vcombine.high %v164_v12, %v168_v14  ;;  %v120_v61 = vld [vmem:[#allocation5 + $0x38] sm:$0xff] }
  0x77   :  { %v236_v4 = vld [vmem:[#allocation5 + $0x3d8] sm:$0xff] }
  0x78   :  { %949 = vmatpush2.bf16.msra.mxu0 %v3828_v20  ;;  %990 = vmatpush2.bf16.msra.mxu1 %v3830_v21  ;;  %v159_v20 = vld [vmem:[#allocation5 + $0x170] sm:$0xff]  ;;  %v156_v21 = vld [vmem:[#allocation5 + $0x158] sm:$0xff] }
  0x79   :  { %950 = vmatprep.subr.bf16.mxu0 %v3821_v22  ;;  %991 = vmatprep.subr.bf16.mxu1 %v3823_v23  ;;  %v160_v22 = vld [vmem:[#allocation5 + $0x178] sm:$0xff]  ;;  %v3770_v23 = vcombine.low %v164_v12, %v168_v14  ;;  %v3761_v24 = vcombine.high %v155_v18, %v159_v20 }
  0x7a   :  { %v3763_v26 = vcombine.high %v156_v21, %v160_v22  ;;  %v240_v5 = vld [vmem:[#allocation5 + $0x3f8] sm:$0xff] }
  0x7b   :  { %v228_v12 = vld [vmem:[#allocation5 + $0x398] sm:$0xff] }
  0x7c   :  { %951 = vmatpush2.bf16.msra.mxu0 %v3820_v28  ;;  %992 = vmatpush2.bf16.msra.mxu1 %v3822_v29  ;;  %v148_v28 = vld [vmem:[#allocation5 + $0x118] sm:$0xff] }
  0x7d   :  { %952 = vmatprep.subr.bf16.mxu0 %v3813_v30  ;;  %993 = vmatprep.subr.bf16.mxu1 %v3815_v31  ;;  %v152_v29 = vld [vmem:[#allocation5 + $0x138] sm:$0xff]  ;;  %v3760_v30 = vcombine.low %v155_v18, %v159_v20  ;;  %v3762_v31 = vcombine.low %v156_v21, %v160_v22  ;;  %v223_v18 = vld [vmem:[#allocation5 + $0x370] sm:$0xff] }
  0x7e   :  { %v3755_v34 = vcombine.high %v148_v28, %v152_v29  ;;  %v3754_v39 = vcombine.low %v148_v28, %v152_v29  ;;  %v232_v14 = vld [vmem:[#allocation5 + $0x3b8] sm:$0xff] }
  0x7f   :  { %v220_v21 = vld [vmem:[#allocation5 + $0x358] sm:$0xff] }
  0x80   :  { %953 = vmatpush2.bf16.msra.mxu0 %v3812_v36  ;;  %994 = vmatpush2.bf16.msra.mxu1 %v3814_v37  ;;  %v140_v36 = vld [vmem:[#allocation5 + $0xd8] sm:$0xff] }
  0x81   :  { %954 = vmatprep.subr.bf16.mxu0 %v3805_v38  ;;  %995 = vmatprep.subr.bf16.mxu1 %v3807_v40  ;;  %v144_v37 = vld [vmem:[#allocation5 + $0xf8] sm:$0xff]  ;;  %v3752_v38 = vcombine.low %v147_v25, %v151_v27  ;;  %v3745_v40 = vcombine.high %v139_v33, %v143_v35  ;;  %v215_v25 = vld [vmem:[#allocation5 + $0x330] sm:$0xff] }
  0x82   :  { %v224_v22 = vld [vmem:[#allocation5 + $0x378] sm:$0xff] }
  0x83   :  { %v212_v28 = vld [vmem:[#allocation5 + $0x318] sm:$0xff] }
  0x84   :  { %955 = vmatpush2.bf16.msra.mxu0 %v3804_v44  ;;  %996 = vmatpush2.bf16.msra.mxu1 %v3806_v45  ;;  %v136_v44 = vld [vmem:[#allocation5 + $0xb8] sm:$0xff]  ;;  %v3744_v45 = vcombine.low %v139_v33, %v143_v35  ;;  %v207_v33 = vld [vmem:[#allocation5 + $0x2f0] sm:$0xff] }
  0x85   :  { %956 = vmatprep.subr.bf16.mxu0 %v3797_v46  ;;  %997 = vmatprep.subr.bf16.mxu1 %v3799_v48  ;;  %v123_v46 = vld [vmem:[#allocation5 + $0x50] sm:$0xff]  ;;  %v3746_v48 = vcombine.low %v140_v36, %v144_v37  ;;  %v216_v29 = vld [vmem:[#allocation5 + $0x338] sm:$0xff] }
  0x86   :  { %v3729_v59 = vcombine.high %v123_v46, %v127_v47 }
  0x88   :  { %957 = vmatpush2.bf16.msra.mxu0 %v3796_v52  ;;  %998 = vmatpush2.bf16.msra.mxu1 %v3798_v54  ;;  %v3739_v52 = vcombine.high %v132_v43, %v136_v44  ;;  %v3736_v54 = vcombine.low %v131_v41, %v135_v42  ;;  %v199_v41 = vld [vmem:[#allocation5 + $0x2b0] sm:$0xff] }
  0x89   :  { %958 = vmatprep.subr.bf16.mxu0 %v3789_v55  ;;  %999 = vmatprep.subr.bf16.mxu1 %v3791_v58  ;;  %v115_v55 = vld [vmem:[#allocation5 + $0x10] sm:$0xff]  ;;  %v3738_v58 = vcombine.low %v132_v43, %v136_v44  ;;  %v196_v43 = vld [vmem:[#allocation5 + $0x298] sm:$0xff] }
  0x8a   :  { %v3721_v3 = vcombine.high %v115_v55, %v119_v56  ;;  %v200_v44 = vld [vmem:[#allocation5 + $0x2b8] sm:$0xff] }
  0x8c   :  { %959 = vmatpush2.bf16.msra.mxu0 %v3788_v62  ;;  %1000 = vmatpush2.bf16.msra.mxu1 %v3790_v63  ;;  %v3731_v62 = vcombine.high %v124_v50, %v128_v51  ;;  %v3728_v63 = vcombine.low %v123_v46, %v127_v47  ;;  %v187_v47 = vld [vmem:[#allocation5 + $0x250] sm:$0xff] }
  0x8d   :  { %960 = vmatprep.subr.bf16.mxu0 %v3781_v0  ;;  %1001 = vmatprep.subr.bf16.mxu1 %v3783_v2  ;;  %v235_v0 = vld [vmem:[#allocation5 + $0x3d0] sm:$0xff]  ;;  %v3730_v2 = vcombine.low %v124_v50, %v128_v51  ;;  %v188_v51 = vld [vmem:[#allocation5 + $0x258] sm:$0xff] }
  0x8e   :  { %v3841_v11 = vcombine.high %v235_v0, %v239_v1 }
  0x90   :  { %961 = vmatpush2.bf16.msra.mxu0 %v3780_v6  ;;  %1002 = vmatpush2.bf16.msra.mxu1 %v3782_v7  ;;  %v3723_v6 = vcombine.high %v116_v60, %v120_v61  ;;  %v3720_v7 = vcombine.low %v115_v55, %v119_v56  ;;  %v179_v56 = vld [vmem:[#allocation5 + $0x210] sm:$0xff] }
  0x91   :  { %1012 = vmatprep.subr.bf16.mxu0 %v3777_v8  ;;  %1053 = vmatprep.subr.bf16.mxu1 %v3779_v10  ;;  %v227_v8 = vld [vmem:[#allocation5 + $0x390] sm:$0xff]  ;;  %v3722_v10 = vcombine.low %v116_v60, %v120_v61  ;;  %v180_v61 = vld [vmem:[#allocation5 + $0x218] sm:$0xff] }
  0x92   :  { %v3833_v20 = vcombine.high %v227_v8, %v231_v9 }
  0x93   :  { %963 = vmatmul.mubr.bf16.vlgmr.msra.gmra.mxu0 %v4964_v13  ;;  %1004 = vmatmul.mubr.bf16.vlgmr.msra.gmra.mxu1 %v4964_v13 }
  0x94   :  { %1013 = vmatpush1.bf16.msra.mxu0 %v3776_v15  ;;  %1054 = vmatpush1.bf16.msra.mxu1 %v3778_v16  ;;  %v3843_v15 = vcombine.high %v236_v4, %v240_v5  ;;  %v3840_v16 = vcombine.low %v235_v0, %v239_v1 }
  0x95   :  { %1014 = vmatprep.subr.bf16.mxu0 %v3769_v17  ;;  %1055 = vmatprep.subr.bf16.mxu1 %v3771_v19  ;;  %v219_v17 = vld [vmem:[#allocation5 + $0x350] sm:$0xff]  ;;  %v3842_v19 = vcombine.low %v236_v4, %v240_v5  ;;  %v4223_v4 = vld [vmem:[#allocation8 + $0xe4] ss:$16 sps:$4 sm:$0xff]  }
  0x96   :  { %1044 = vmatprep.mubr.bf16.mxu0 %v4958_v57  ;;  %1085 = vmatprep.mubr.bf16.mxu1 %v4958_v57  ;;  %v3747_v57 = vcombine.high %v140_v36, %v144_v37  ;;  %v3825_v27 = vcombine.high %v219_v17, %v223_v18  ;;  %v204_v36 = vld [vmem:[#allocation5 + $0x2d8] sm:$0xff] }
  0x97   :  { %v208_v37 = vld [vmem:[#allocation5 + $0x2f8] sm:$0xff] }
  0x98   :  { %1015 = vmatpush1.bf16.msra.mxu0 %v3768_v53  ;;  %1056 = vmatpush1.bf16.msra.mxu1 %v3770_v23  ;;  %v3835_v53 = vcombine.high %v228_v12, %v232_v14  ;;  %v3832_v23 = vcombine.low %v227_v8, %v231_v9  ;;  %v4221_v8 = vld [vmem:[#allocation8 + $0xe0] ss:$16 sps:$4 sm:$0xff]  }
  0x99   :  { %1016 = vmatprep.subr.bf16.mxu0 %v3761_v24  ;;  %1057 = vmatprep.subr.bf16.mxu1 %v3763_v26  ;;  %v211_v24 = vld [vmem:[#allocation5 + $0x310] sm:$0xff]  ;;  %v3834_v26 = vcombine.low %v228_v12, %v232_v14  ;;  %v4224_v9 = vld [vmem:[#allocation8 + $0x2e0] ss:$16 sps:$4 sm:$0xff]  }
  0x9a   :  { %v3817_v35 = vcombine.high %v211_v24, %v215_v25  ;;  %v4227_v12 = vld [vmem:[#allocation8 + $0xc0] ss:$16 sps:$4 sm:$0xff]  }
  0x9b   :  { %v4230_v14 = vld [vmem:[#allocation8 + $0x2c0] ss:$16 sps:$4 sm:$0xff]  }
  0x9c   :  { %1017 = vmatpush1.bf16.msra.mxu0 %v3760_v30  ;;  %1058 = vmatpush1.bf16.msra.mxu1 %v3762_v31  ;;  %v3827_v30 = vcombine.high %v220_v21, %v224_v22  ;;  %v3824_v31 = vcombine.low %v219_v17, %v223_v18  ;;  %v4233_v17 = vld [vmem:[#allocation8 + $0xa0] ss:$16 sps:$4 sm:$0xff]  }
  0x9d   :  { %1018 = vmatprep.subr.bf16.mxu0 %v3753_v32  ;;  %1059 = vmatprep.subr.bf16.mxu1 %v3755_v34  ;;  %v203_v32 = vld [vmem:[#allocation5 + $0x2d0] sm:$0xff]  ;;  %v3826_v34 = vcombine.low %v220_v21, %v224_v22  ;;  %v4236_v18 = vld [vmem:[#allocation8 + $0x2a0] ss:$16 sps:$4 sm:$0xff]  }
  0x9e   :  { %v3809_v42 = vcombine.high %v203_v32, %v207_v33  ;;  %v3808_v46 = vcombine.low %v203_v32, %v207_v33  ;;  %v4239_v21 = vld [vmem:[#allocation8 + $0x80] ss:$16 sps:$4 sm:$0xff]   ;;  %v4265_v33 = vld [vmem:[#allocation8 + $0x4] ss:$16 sps:$4 sm:$0xff]  }
  0x9f   :  { %v4242_v22 = vld [vmem:[#allocation8 + $0x280] ss:$16 sps:$4 sm:$0xff]  }
  0xa0   :  { %1019 = vmatpush1.bf16.msra.mxu0 %v3752_v38  ;;  %1060 = vmatpush1.bf16.msra.mxu1 %v3754_v39  ;;  %v3819_v38 = vcombine.high %v212_v28, %v216_v29  ;;  %v3816_v39 = vcombine.low %v211_v24, %v215_v25  ;;  %v4248_v24 = vld [vmem:[#allocation8 + $0x260] ss:$16 sps:$4 sm:$0xff]   ;;  %v4253_v25 = vld [vmem:[#allocation8 + $0x44] ss:$16 sps:$4 sm:$0xff]  }
  0xa1   :  { %1020 = vmatprep.subr.bf16.mxu0 %v3745_v40  ;;  %1061 = vmatprep.subr.bf16.mxu1 %v3747_v57  ;;  %v195_v40 = vld [vmem:[#allocation5 + $0x290] sm:$0xff]  ;;  %v3818_v57 = vcombine.low %v212_v28, %v216_v29  ;;  %v4254_v28 = vld [vmem:[#allocation8 + $0x240] ss:$16 sps:$4 sm:$0xff]   ;;  %v4259_v29 = vld [vmem:[#allocation8 + $0x24] ss:$16 sps:$4 sm:$0xff]  }
  0xa2   :  { %v3801_v50 = vcombine.high %v195_v40, %v199_v41  ;;  %v3800_v55 = vcombine.low %v195_v40, %v199_v41  ;;  %v4260_v32 = vld [vmem:[#allocation8 + $0x220] ss:$16 sps:$4 sm:$0xff]   ;;  %v4277_v41 = vld [vmem:[#allocation8 + $0x1c4] ss:$16 sps:$4 sm:$0xff]  }
  0xa3   :  { %v4272_v40 = vld [vmem:[#allocation8 + $0x3e0] ss:$16 sps:$4 sm:$0xff]  }
  0xa4   :  { %1021 = vmatpush1.bf16.msra.mxu0 %v3744_v45  ;;  %1062 = vmatpush1.bf16.msra.mxu1 %v3746_v48  ;;  %v3811_v45 = vcombine.high %v204_v36, %v208_v37  ;;  %v191_v48 = vld [vmem:[#allocation5 + $0x270] sm:$0xff] }
  0xa5   :  { %1022 = vmatprep.subr.bf16.mxu0 %v3737_v49  ;;  %1063 = vmatprep.subr.bf16.mxu1 %v3739_v52  ;;  %v3810_v49 = vcombine.low %v204_v36, %v208_v37  ;;  %v192_v52 = vld [vmem:[#allocation5 + $0x278] sm:$0xff]  ;;  %v3793_v60 = vcombine.high %v187_v47, %v191_v48  ;;  %v3792_v0 = vcombine.low %v187_v47, %v191_v48 }
  0xa6   :  { %v3794_v1 = vcombine.low %v188_v51, %v192_v52  ;;  %v4266_v36 = vld [vmem:[#allocation8 + $0x200] ss:$16 sps:$4 sm:$0xff]   ;;  %v4271_v37 = vld [vmem:[#allocation8 + $0x1e4] ss:$16 sps:$4 sm:$0xff]  }
  0xa7   :  { %v4284_v47 = vld [vmem:[#allocation8 + $0x3a0] ss:$16 sps:$4 sm:$0xff]   ;;  %v4289_v48 = vld [vmem:[#allocation8 + $0x184] ss:$16 sps:$4 sm:$0xff]  }
  0xa8   :  { %1023 = vmatpush1.bf16.msra.mxu0 %v3736_v54  ;;  %1064 = vmatpush1.bf16.msra.mxu1 %v3738_v58  ;;  %v3803_v54 = vcombine.high %v196_v43, %v200_v44  ;;  %v183_v58 = vld [vmem:[#allocation5 + $0x230] sm:$0xff] }
  0xa9   :  { %1024 = vmatprep.subr.bf16.mxu0 %v3729_v59  ;;  %1065 = vmatprep.subr.bf16.mxu1 %v3731_v62  ;;  %v3802_v59 = vcombine.low %v196_v43, %v200_v44  ;;  %v184_v62 = vld [vmem:[#allocation5 + $0x238] sm:$0xff]  ;;  %v3784_v5 = vcombine.low %v179_v56, %v183_v58 }
  0xaa   :  { %v4278_v43 = vld [vmem:[#allocation8 + $0x3c0] ss:$16 sps:$4 sm:$0xff]   ;;  %v4283_v44 = vld [vmem:[#allocation8 + $0x1a4] ss:$16 sps:$4 sm:$0xff]  }
  0xac   :  { %1025 = vmatpush1.bf16.msra.mxu0 %v3728_v63  ;;  %1066 = vmatpush1.bf16.msra.mxu1 %v3730_v2  ;;  %v3795_v63 = vcombine.high %v188_v51, %v192_v52  ;;  %v3785_v2 = vcombine.high %v179_v56, %v183_v58  ;;  %v4290_v51 = vld [vmem:[#allocation8 + $0x380] ss:$16 sps:$4 sm:$0xff]   ;;  %v4295_v52 = vld [vmem:[#allocation8 + $0x164] ss:$16 sps:$4 sm:$0xff]  }
  0xad   :  { %1026 = vmatprep.subr.bf16.mxu0 %v3721_v3  ;;  %1067 = vmatprep.subr.bf16.mxu1 %v3723_v6  ;;  %v3787_v3 = vcombine.high %v180_v61, %v184_v62  ;;  %v4226_v6 = vld [vmem:[#allocation8 + $0x2e4] ss:$16 sps:$4 sm:$0xff]   ;;  %v4296_v56 = vld [vmem:[#allocation8 + $0x360] ss:$16 sps:$4 sm:$0xff]  }
  0xae   :  { %v4301_v58 = vld [vmem:[#allocation8 + $0x144] ss:$16 sps:$4 sm:$0xff]  }
  0xb0   :  { %1027 = vmatpush1.bf16.msra.mxu0 %v3720_v7  ;;  %1068 = vmatpush1.bf16.msra.mxu1 %v3722_v10  ;;  %v3786_v7 = vcombine.low %v180_v61, %v184_v62  ;;  %v4229_v10 = vld [vmem:[#allocation8 + $0xc4] ss:$16 sps:$4 sm:$0xff]   ;;  %v4302_v61 = vld [vmem:[#allocation8 + $0x340] ss:$16 sps:$4 sm:$0xff]  }
  0xb1   :  { %1028 = vmatprep.subr.bf16.mxu0 %v3841_v11  ;;  %1069 = vmatprep.subr.bf16.mxu1 %v3843_v15  ;;  %v4232_v11 = vld [vmem:[#allocation8 + $0x2c4] ss:$16 sps:$4 sm:$0xff]  }
  0xb2   :  { %v4235_v15 = vld [vmem:[#allocation8 + $0xa4] ss:$16 sps:$4 sm:$0xff]  }
  0xb3   :  { %v4307_v62 = vld [vmem:[#allocation8 + $0x124] ss:$16 sps:$4 sm:$0xff]  }
  0xb4   :  { %1029 = vmatpush2.bf16.msra.mxu0 %v3840_v16  ;;  %1070 = vmatpush2.bf16.msra.mxu1 %v3842_v19  ;;  %v4238_v16 = vld [vmem:[#allocation8 + $0x2a4] ss:$16 sps:$4 sm:$0xff]  }
  0xb5   :  { %1030 = vmatprep.subr.bf16.mxu0 %v3833_v20  ;;  %1071 = vmatprep.subr.bf16.mxu1 %v3835_v53  ;;  %v4241_v19 = vld [vmem:[#allocation8 + $0x84] ss:$16 sps:$4 sm:$0xff]  }
  0xb6   :  { %v4244_v20 = vld [vmem:[#allocation8 + $0x284] ss:$16 sps:$4 sm:$0xff]  }
  0xb7   :  { %v4250_v53 = vld [vmem:[#allocation8 + $0x264] ss:$16 sps:$4 sm:$0xff]  }
  0xb8   :  { %1031 = vmatpush2.bf16.msra.mxu0 %v3832_v23  ;;  %1072 = vmatpush2.bf16.msra.mxu1 %v3834_v26  ;;  %v4245_v23 = vld [vmem:[#allocation8 + $0x60] ss:$16 sps:$4 sm:$0xff]   ;;  %v4256_v26 = vld [vmem:[#allocation8 + $0x244] ss:$16 sps:$4 sm:$0xff]  }
  0xb9   :  { %1032 = vmatprep.subr.bf16.mxu0 %v3825_v27  ;;  %1073 = vmatprep.subr.bf16.mxu1 %v3827_v30  ;;  %v4251_v27 = vld [vmem:[#allocation8 + $0x40] ss:$16 sps:$4 sm:$0xff]   ;;  %v4262_v30 = vld [vmem:[#allocation8 + $0x224] ss:$16 sps:$4 sm:$0xff]  }
  0xbc   :  { %1033 = vmatpush2.bf16.msra.mxu0 %v3824_v31  ;;  %1074 = vmatpush2.bf16.msra.mxu1 %v3826_v34  ;;  %v4257_v31 = vld [vmem:[#allocation8 + $0x20] ss:$16 sps:$4 sm:$0xff]   ;;  %v4268_v34 = vld [vmem:[#allocation8 + $0x204] ss:$16 sps:$4 sm:$0xff]  }
  0xbd   :  { %1034 = vmatprep.subr.bf16.mxu0 %v3817_v35  ;;  %1075 = vmatprep.subr.bf16.mxu1 %v3819_v38  ;;  %v4263_v35 = vld [vmem:[#allocation8] ss:$16 sps:$4 sm:$0xff]   ;;  %v4274_v38 = vld [vmem:[#allocation8 + $0x3e4] ss:$16 sps:$4 sm:$0xff]  }
  0xc0   :  { %1035 = vmatpush2.bf16.msra.mxu0 %v3816_v39  ;;  %1076 = vmatpush2.bf16.msra.mxu1 %v3818_v57  ;;  %v4269_v39 = vld [vmem:[#allocation8 + $0x1e0] ss:$16 sps:$4 sm:$0xff]   ;;  %v4280_v57 = vld [vmem:[#allocation8 + $0x3c4] ss:$16 sps:$4 sm:$0xff]  }
  0xc1   :  { %1036 = vmatprep.subr.bf16.mxu0 %v3809_v42  ;;  %1077 = vmatprep.subr.bf16.mxu1 %v3811_v45  ;;  %v4275_v42 = vld [vmem:[#allocation8 + $0x1c0] ss:$16 sps:$4 sm:$0xff]   ;;  %v4286_v45 = vld [vmem:[#allocation8 + $0x3a4] ss:$16 sps:$4 sm:$0xff]  }
  0xc4   :  { %1037 = vmatpush2.bf16.msra.mxu0 %v3808_v46  ;;  %1078 = vmatpush2.bf16.msra.mxu1 %v3810_v49  ;;  %v4281_v46 = vld [vmem:[#allocation8 + $0x1a0] ss:$16 sps:$4 sm:$0xff]   ;;  %v4292_v49 = vld [vmem:[#allocation8 + $0x384] ss:$16 sps:$4 sm:$0xff]  }
  0xc5   :  { %1038 = vmatprep.subr.bf16.mxu0 %v3801_v50  ;;  %1079 = vmatprep.subr.bf16.mxu1 %v3803_v54  ;;  %v4287_v50 = vld [vmem:[#allocation8 + $0x180] ss:$16 sps:$4 sm:$0xff]   ;;  %v4298_v54 = vld [vmem:[#allocation8 + $0x364] ss:$16 sps:$4 sm:$0xff]  }
  0xc8   :  { %1039 = vmatpush2.bf16.msra.mxu0 %v3800_v55  ;;  %1080 = vmatpush2.bf16.msra.mxu1 %v3802_v59  ;;  %v4293_v55 = vld [vmem:[#allocation8 + $0x160] ss:$16 sps:$4 sm:$0xff]   ;;  %v4304_v59 = vld [vmem:[#allocation8 + $0x344] ss:$16 sps:$4 sm:$0xff]  }
  0xc9   :  { %1040 = vmatprep.subr.bf16.mxu0 %v3793_v60  ;;  %1081 = vmatprep.subr.bf16.mxu1 %v3795_v63  ;;  %v4299_v60 = vld [vmem:[#allocation8 + $0x140] ss:$16 sps:$4 sm:$0xff]   ;;  %v4310_v63 = vld [vmem:[#allocation8 + $0x324] ss:$16 sps:$4 sm:$0xff]  }
  0xcc   :  { %1041 = vmatpush2.bf16.msra.mxu0 %v3792_v0  ;;  %1082 = vmatpush2.bf16.msra.mxu1 %v3794_v1  ;;  %v4305_v0 = vld [vmem:[#allocation8 + $0x120] ss:$16 sps:$4 sm:$0xff]  }
  0xcd   :  { %1042 = vmatprep.subr.bf16.mxu0 %v3785_v2  ;;  %1083 = vmatprep.subr.bf16.mxu1 %v3787_v3  ;;  %v4308_v1 = vld [vmem:[#allocation8 + $0x320] ss:$16 sps:$4 sm:$0xff]   ;;  %v4313_v2 = vld [vmem:[#allocation8 + $0x104] ss:$16 sps:$4 sm:$0xff]  }
  0xce   :  { %v4316_v3 = vld [vmem:[#allocation8 + $0x304] ss:$16 sps:$4 sm:$0xff]  }
  0xd0   :  { %1043 = vmatpush2.bf16.msra.mxu0 %v3784_v5  ;;  %1084 = vmatpush2.bf16.msra.mxu1 %v3786_v7  ;;  %v4314_v5 = vld [vmem:[#allocation8 + $0x300] ss:$16 sps:$4 sm:$0xff]   ;;  %v4322_v7 = vld [vmem:[#allocation8 + $0x6e4] ss:$16 sps:$4 sm:$0xff]  }
  0xd1   :  { %2684 = vmatprep.subr.bf16.mxu0 %v4223_v4  ;;  %2725 = vmatprep.subr.bf16.mxu1 %v4226_v6  ;;  %v4311_v4 = vld [vmem:[#allocation8 + $0x100] ss:$16 sps:$4 sm:$0xff]   ;;  %v4319_v6 = vld [vmem:[#allocation8 + $0x4e4] ss:$16 sps:$4 sm:$0xff]  }
  0xd3   :  { %1045 = vmatmul.mubr.bf16.vlgmr.msra.gmra.mxu0 %v4964_v13  ;;  %1086 = vmatmul.mubr.bf16.vlgmr.msra.gmra.mxu1 %v4964_v13  ;;  %v4247_v13 = vld [vmem:[#allocation8 + $0x64] ss:$16 sps:$4 sm:$0xff]  }
  0xd4   :  { %2685 = vmatpush1.bf16.msra.mxu0 %v4221_v8  ;;  %2726 = vmatpush1.bf16.msra.mxu1 %v4224_v9  ;;  %v243_v8 = vlaneseq }
  0xd5   :  { %2686 = vmatprep.subr.bf16.mxu0 %v4229_v10  ;;  %2727 = vmatprep.subr.bf16.mxu1 %v4232_v11  ;;  %v4977_v11 = vld [vmem:[#allocation7] sm:$0xff] }
  0xd6   :  { %v4972_v9 = vshrl.u32 %v243_v8, 7  ;;  %v4362_v8 = vld [vmem:[#allocation8 + $0x600] ss:$16 sps:$4 sm:$0xff]  }
  0xd8   :  { %2687 = vmatpush1.bf16.msra.mxu0 %v4227_v12  ;;  %2728 = vmatpush1.bf16.msra.mxu1 %v4230_v14  ;;  %v4975_v10 = vsub.s32 0, %v4972_v9  ;;  %v253_v12 = vsub.s32 2, %v4972_v9  ;;  %v4981_v14 = vsub.s32 1, %v4972_v9 }
  0xd9   :  { %2688 = vmatprep.subr.bf16.mxu0 %v4235_v15  ;;  %2729 = vmatprep.subr.bf16.mxu1 %v4238_v16  ;;  %v257_v15 = vsub.s32 3, %v4972_v9 }
  0xda   :  { %v246_v16 = vrot.slane %v4977_v11, %v4975_v10 }
  0xdc   :  { %2689 = vmatpush1.bf16.msra.mxu0 %v4233_v17  ;;  %2730 = vmatpush1.bf16.msra.mxu1 %v4236_v18  ;;  %v254_v17 = vrot.slane %v4977_v11, %v253_v12  ;;  %v250_v18 = vrot.slane %v4977_v11, %v4981_v14 }
  0xdd   :  { %2690 = vmatprep.subr.bf16.mxu0 %v4241_v19  ;;  %2731 = vmatprep.subr.bf16.mxu1 %v4244_v20  ;;  %v258_v20 = vrot.slane %v4977_v11, %v257_v15 }
  0xe0   :  { %2691 = vmatpush1.bf16.msra.mxu0 %v4239_v21  ;;  %2732 = vmatpush1.bf16.msra.mxu1 %v4242_v22 }
  0xe1   :  { %2692 = vmatprep.subr.bf16.mxu0 %v4247_v13  ;;  %2733 = vmatprep.subr.bf16.mxu1 %v4250_v53 }
  0xe4   :  { %2693 = vmatpush1.bf16.msra.mxu0 %v4245_v23  ;;  %2734 = vmatpush1.bf16.msra.mxu1 %v4248_v24 }
  0xe5   :  { %2694 = vmatprep.subr.bf16.mxu0 %v4253_v25  ;;  %2735 = vmatprep.subr.bf16.mxu1 %v4256_v26 }
  0xe8   :  { %2695 = vmatpush1.bf16.msra.mxu0 %v4251_v27  ;;  %2736 = vmatpush1.bf16.msra.mxu1 %v4254_v28 }
  0xe9   :  { %2696 = vmatprep.subr.bf16.mxu0 %v4259_v29  ;;  %2737 = vmatprep.subr.bf16.mxu1 %v4262_v30 }
  0xec   :  { %2697 = vmatpush1.bf16.msra.mxu0 %v4257_v31  ;;  %2738 = vmatpush1.bf16.msra.mxu1 %v4260_v32 }
  0xed   :  { %2698 = vmatprep.subr.bf16.mxu0 %v4265_v33  ;;  %2739 = vmatprep.subr.bf16.mxu1 %v4268_v34 }
  0xf0   :  { %2699 = vmatpush1.bf16.msra.mxu0 %v4263_v35  ;;  %2740 = vmatpush1.bf16.msra.mxu1 %v4266_v36 }
  0xf1   :  { %2700 = vmatprep.subr.bf16.mxu0 %v4271_v37  ;;  %2741 = vmatprep.subr.bf16.mxu1 %v4274_v38 }
  0xf4   :  { %2701 = vmatpush2.bf16.msra.mxu0 %v4269_v39  ;;  %2742 = vmatpush2.bf16.msra.mxu1 %v4272_v40  ;;  %v4317_v39 = vld [vmem:[#allocation8 + $0x4e0] ss:$16 sps:$4 sm:$0xff]  }
  0xf5   :  { %2702 = vmatprep.subr.bf16.mxu0 %v4277_v41  ;;  %2743 = vmatprep.subr.bf16.mxu1 %v4280_v57  ;;  %v4320_v57 = vld [vmem:[#allocation8 + $0x6e0] ss:$16 sps:$4 sm:$0xff]  }
  0xf8   :  { %2703 = vmatpush2.bf16.msra.mxu0 %v4275_v42  ;;  %2744 = vmatpush2.bf16.msra.mxu1 %v4278_v43  ;;  %v4325_v42 = vld [vmem:[#allocation8 + $0x4c4] ss:$16 sps:$4 sm:$0xff]  }
  0xf9   :  { %2704 = vmatprep.subr.bf16.mxu0 %v4283_v44  ;;  %2745 = vmatprep.subr.bf16.mxu1 %v4286_v45  ;;  %v4328_v44 = vld [vmem:[#allocation8 + $0x6c4] ss:$16 sps:$4 sm:$0xff]   ;;  %v4323_v45 = vld [vmem:[#allocation8 + $0x4c0] ss:$16 sps:$4 sm:$0xff]  }
  0xfc   :  { %2705 = vmatpush2.bf16.msra.mxu0 %v4281_v46  ;;  %2746 = vmatpush2.bf16.msra.mxu1 %v4284_v47  ;;  %v4326_v46 = vld [vmem:[#allocation8 + $0x6c0] ss:$16 sps:$4 sm:$0xff]   ;;  %v4331_v47 = vld [vmem:[#allocation8 + $0x4a4] ss:$16 sps:$4 sm:$0xff]  }
  0xfd   :  { %2706 = vmatprep.subr.bf16.mxu0 %v4289_v48  ;;  %2747 = vmatprep.subr.bf16.mxu1 %v4292_v49  ;;  %v4334_v48 = vld [vmem:[#allocation8 + $0x6a4] ss:$16 sps:$4 sm:$0xff]   ;;  %v4329_v49 = vld [vmem:[#allocation8 + $0x4a0] ss:$16 sps:$4 sm:$0xff]  }
 0x100   :  { %2707 = vmatpush2.bf16.msra.mxu0 %v4287_v50  ;;  %2748 = vmatpush2.bf16.msra.mxu1 %v4290_v51  ;;  %v4332_v50 = vld [vmem:[#allocation8 + $0x6a0] ss:$16 sps:$4 sm:$0xff]   ;;  %v4337_v51 = vld [vmem:[#allocation8 + $0x484] ss:$16 sps:$4 sm:$0xff]  }
 0x101   :  { %2708 = vmatprep.subr.bf16.mxu0 %v4295_v52  ;;  %2749 = vmatprep.subr.bf16.mxu1 %v4298_v54  ;;  %v4340_v52 = vld [vmem:[#allocation8 + $0x684] ss:$16 sps:$4 sm:$0xff]   ;;  %v4335_v54 = vld [vmem:[#allocation8 + $0x480] ss:$16 sps:$4 sm:$0xff]  }
 0x104   :  { %2709 = vmatpush2.bf16.msra.mxu0 %v4293_v55  ;;  %2750 = vmatpush2.bf16.msra.mxu1 %v4296_v56  ;;  %v4338_v55 = vld [vmem:[#allocation8 + $0x680] ss:$16 sps:$4 sm:$0xff]   ;;  %v4343_v56 = vld [vmem:[#allocation8 + $0x464] ss:$16 sps:$4 sm:$0xff]  }
 0x105   :  { %2710 = vmatprep.subr.bf16.mxu0 %v4301_v58  ;;  %2751 = vmatprep.subr.bf16.mxu1 %v4304_v59  ;;  %v4346_v58 = vld [vmem:[#allocation8 + $0x664] ss:$16 sps:$4 sm:$0xff]   ;;  %v4341_v59 = vld [vmem:[#allocation8 + $0x460] ss:$16 sps:$4 sm:$0xff]  }
 0x108   :  { %2711 = vmatpush2.bf16.msra.mxu0 %v4299_v60  ;;  %2752 = vmatpush2.bf16.msra.mxu1 %v4302_v61  ;;  %v4344_v60 = vld [vmem:[#allocation8 + $0x660] ss:$16 sps:$4 sm:$0xff]   ;;  %v4349_v61 = vld [vmem:[#allocation8 + $0x444] ss:$16 sps:$4 sm:$0xff]  }
 0x109   :  { %2712 = vmatprep.subr.bf16.mxu0 %v4307_v62  ;;  %2753 = vmatprep.subr.bf16.mxu1 %v4310_v63  ;;  %v4352_v62 = vld [vmem:[#allocation8 + $0x644] ss:$16 sps:$4 sm:$0xff]   ;;  %v4347_v63 = vld [vmem:[#allocation8 + $0x440] ss:$16 sps:$4 sm:$0xff]  }
 0x10c   :  { %2713 = vmatpush2.bf16.msra.mxu0 %v4305_v0  ;;  %2754 = vmatpush2.bf16.msra.mxu1 %v4308_v1  ;;  %v4350_v0 = vld [vmem:[#allocation8 + $0x640] ss:$16 sps:$4 sm:$0xff]   ;;  %v4355_v1 = vld [vmem:[#allocation8 + $0x424] ss:$16 sps:$4 sm:$0xff]  }
 0x10d   :  { %2714 = vmatprep.subr.bf16.mxu0 %v4313_v2  ;;  %2755 = vmatprep.subr.bf16.mxu1 %v4316_v3  ;;  %v4358_v2 = vld [vmem:[#allocation8 + $0x624] ss:$16 sps:$4 sm:$0xff]   ;;  %v4353_v3 = vld [vmem:[#allocation8 + $0x420] ss:$16 sps:$4 sm:$0xff]  }
 0x110   :  { %2715 = vmatpush2.bf16.msra.mxu0 %v4311_v4  ;;  %2756 = vmatpush2.bf16.msra.mxu1 %v4314_v5  ;;  %v4356_v4 = vld [vmem:[#allocation8 + $0x620] ss:$16 sps:$4 sm:$0xff]   ;;  %v4361_v5 = vld [vmem:[#allocation8 + $0x404] ss:$16 sps:$4 sm:$0xff]  }
 0x111   :  { %2766 = vmatprep.subr.bf16.mxu0 %v4319_v6  ;;  %2807 = vmatprep.subr.bf16.mxu1 %v4322_v7  ;;  %v4364_v6 = vld [vmem:[#allocation8 + $0x604] ss:$16 sps:$4 sm:$0xff]   ;;  %v4359_v7 = vld [vmem:[#allocation8 + $0x400] ss:$16 sps:$4 sm:$0xff]  }
 0x153   :  { %v964_v19 = vpop.f32.mrf.mxu0  ;;  %v1005_v22 = vpop.f32.mrf.mxu1 }
 0x154   :  { %v965_v21 = vadd.f32 %v964_v19, %v246_v16  ;;  %v1006_v13 = vadd.f32 %v1005_v22, %v254_v17  ;;  %v4367_v16 = vld [vmem:[#allocation8 + $0x5e4] ss:$16 sps:$4 sm:$0xff]   ;;  %v4368_v19 = vld [vmem:[#allocation8 + $0x7e0] ss:$16 sps:$4 sm:$0xff]  }
 0x155   :  { %v966_v53 = vpop.f32.mrf.mxu0  ;;  %v1007_v25 = vpop.f32.mrf.mxu1  ;;  %v4370_v17 = vld [vmem:[#allocation8 + $0x7e4] ss:$16 sps:$4 sm:$0xff]   ;;  %v4371_v22 = vld [vmem:[#allocation8 + $0x5c0] ss:$16 sps:$4 sm:$0xff]  }
 0x156   :  { %vm1094_vm0 = vcmp.gt.f32.partialorder %v965_v21, 0.0  ;;  %v1102_v23 = vmul.f32 0.2, %v965_v21  ;;  %v967_v24 = vadd.f32 %v966_v53, %v250_v18  ;;  %vm1096_vm1 = vcmp.gt.f32.partialorder %v1006_v13, 0.0  ;;  %v4365_v18 = vld [vmem:[#allocation8 + $0x5e0] ss:$16 sps:$4 sm:$0xff]  }
 0x157   :  { %v1104_v26 = vmul.f32 0.2, %v1006_v13  ;;  %v1008_v27 = vadd.f32 %v1007_v25, %v258_v20  ;;  %v968_v28 = vpop.f32.mrf.mxu0  ;;  %v1009_v30 = vpop.f32.mrf.mxu1  ;;  %v4373_v20 = vld [vmem:[#allocation8 + $0x5c4] ss:$16 sps:$4 sm:$0xff]   ;;  %v4380_v25 = vld [vmem:[#allocation8 + $0x7a0] ss:$16 sps:$4 sm:$0xff]  }
 0x158   :  { %vm1095_vm2 = vcmp.gt.f32.partialorder %v967_v24, 0.0  ;;  %v1103_v29 = vmul.f32 0.2, %v967_v24  ;;  %v1110_v31 = vsel %vm1094_vm0, %v965_v21, %v1102_v23  ;;  %v4376_v21 = vld [vmem:[#allocation8 + $0x7c4] ss:$16 sps:$4 sm:$0xff]  }
 0x159   :  { %vm1097_vm3 = vcmp.gt.f32.partialorder %v1008_v27, 0.0  ;;  %v1105_v32 = vmul.f32 0.2, %v1008_v27  ;;  %v969_v33 = vpop.f32.mrf.mxu0  ;;  %v1112_v34 = vsel %vm1096_vm1, %v1006_v13, %v1104_v26  ;;  %v1010_v35 = vpop.f32.mrf.mxu1  ;;  %v4996_v40 = vpack.c.bf16 %v1110_v31, %v1110_v31  ;;  %v4374_v13 = vld [vmem:[#allocation8 + $0x7c0] ss:$16 sps:$4 sm:$0xff]  }
 0x15a   :  { %v1111_v36 = vsel %vm1095_vm2, %v967_v24, %v1103_v29  ;;  %v5000_v43 = vpack.c.bf16 %v1112_v34, %v1112_v34  ;;  %v4379_v53 = vld [vmem:[#allocation8 + $0x5a4] ss:$16 sps:$4 sm:$0xff]   ;;  %v4377_v24 = vld [vmem:[#allocation8 + $0x5a0] ss:$16 sps:$4 sm:$0xff]   ;;  %v261_v35 = vsub.s32 4, %v4972_v9 }
 0x15b   :  { %v4994_v37 = vpack.c.bf16 %v1111_v36, %v1111_v36  ;;  %v1113_v38 = vsel %vm1097_vm3, %v1008_v27, %v1105_v32  ;;  %v4382_v23 = vld [vmem:[#allocation8 + $0x7a4] ss:$16 sps:$4 sm:$0xff]   ;;  %v4383_v28 = vld [vmem:[#allocation8 + $0x580] ss:$16 sps:$4 sm:$0xff]  }
 0x15c   :  { %v4998_v41 = vpack.c.bf16 %v1113_v38, %v1113_v38  ;;  %v4385_v26 = vld [vmem:[#allocation8 + $0x584] ss:$16 sps:$4 sm:$0xff]   ;;  %v4386_v29 = vld [vmem:[#allocation8 + $0x780] ss:$16 sps:$4 sm:$0xff]   ;;  %v269_v38 = vsub.s32 6, %v4972_v9 }
 0x15d   :  { %2716 = vmatprep.mubr.bf16.mxu0 %v4994_v37  ;;  %v4388_v27 = vld [vmem:[#allocation8 + $0x784] ss:$16 sps:$4 sm:$0xff]   ;;  %v4389_v32 = vld [vmem:[#allocation8 + $0x560] ss:$16 sps:$4 sm:$0xff]  }
 0x15e   :  { %2757 = vmatprep.mubr.bf16.mxu1 %v4998_v41  ;;  %2717 = vmatmul.mubr.bf16.vlgmr.msra.gmra.mxu0 %v4996_v40  ;;  %v4391_v30 = vld [vmem:[#allocation8 + $0x564] ss:$16 sps:$4 sm:$0xff]   ;;  %v4392_v33 = vld [vmem:[#allocation8 + $0x760] ss:$16 sps:$4 sm:$0xff]  }
 0x15f   :  { %2758 = vmatmul.mubr.bf16.vlgmr.msra.gmra.mxu1 %v5000_v43  ;;  %2767 = vmatpush1.bf16.msra.mxu0 %v4317_v39  ;;  %v4394_v31 = vld [vmem:[#allocation8 + $0x764] ss:$16 sps:$4 sm:$0xff]   ;;  %v265_v39 = vsub.s32 5, %v4972_v9 }
 0x160   :  { %2808 = vmatpush1.bf16.msra.mxu1 %v4320_v57  ;;  %2768 = vmatprep.subr.bf16.mxu0 %v4325_v42  ;;  %v4397_v34 = vld [vmem:[#allocation8 + $0x544] ss:$16 sps:$4 sm:$0xff]   ;;  %v4395_v57 = vld [vmem:[#allocation8 + $0x540] ss:$16 sps:$4 sm:$0xff]   ;;  %v273_v42 = vsub.s32 7, %v4972_v9 }
 0x161   :  { %2809 = vmatprep.subr.bf16.mxu1 %v4328_v44  ;;  %v4400_v36 = vld [vmem:[#allocation8 + $0x744] ss:$16 sps:$4 sm:$0xff]   ;;  %v4398_v44 = vld [vmem:[#allocation8 + $0x740] ss:$16 sps:$4 sm:$0xff]  }
 0x163   :  { %2769 = vmatpush1.bf16.msra.mxu0 %v4323_v45  ;;  %v262_v45 = vrot.slane %v4977_v11, %v261_v35  ;;  %v4433_v35 = vld [vmem:[#allocation8 + $0x8c] ss:$16 sps:$4 sm:$0xff]  }
 0x164   :  { %2810 = vmatpush1.bf16.msra.mxu1 %v4326_v46  ;;  %2770 = vmatprep.subr.bf16.mxu0 %v4331_v47  ;;  %v4403_v46 = vld [vmem:[#allocation8 + $0x524] ss:$16 sps:$4 sm:$0xff]   ;;  %v270_v47 = vrot.slane %v4977_v11, %v269_v38  ;;  %v4431_v38 = vld [vmem:[#allocation8 + $0x88] ss:$16 sps:$4 sm:$0xff]  }
 0x165   :  { %2811 = vmatprep.subr.bf16.mxu1 %v4334_v48  ;;  %v4406_v48 = vld [vmem:[#allocation8 + $0x724] ss:$16 sps:$4 sm:$0xff]  }
 0x167   :  { %2771 = vmatpush1.bf16.msra.mxu0 %v4329_v49  ;;  %v266_v49 = vrot.slane %v4977_v11, %v265_v39  ;;  %v4439_v39 = vld [vmem:[#allocation8 + $0x6c] ss:$16 sps:$4 sm:$0xff]  }
 0x168   :  { %2812 = vmatpush1.bf16.msra.mxu1 %v4332_v50  ;;  %2772 = vmatprep.subr.bf16.mxu0 %v4337_v51  ;;  %v274_v51 = vrot.slane %v4977_v11, %v273_v42  ;;  %v4440_v42 = vld [vmem:[#allocation8 + $0x268] ss:$16 sps:$4 sm:$0xff]  }
 0x169   :  { %2813 = vmatprep.subr.bf16.mxu1 %v4340_v52  ;;  %v4401_v52 = vld [vmem:[#allocation8 + $0x520] ss:$16 sps:$4 sm:$0xff]  }
 0x16b   :  { %2773 = vmatpush1.bf16.msra.mxu0 %v4335_v54 }
 0x16c   :  { %2814 = vmatpush1.bf16.msra.mxu1 %v4338_v55  ;;  %2774 = vmatprep.subr.bf16.mxu0 %v4343_v56  ;;  %v4404_v56 = vld [vmem:[#allocation8 + $0x720] ss:$16 sps:$4 sm:$0xff]  }
 0x16d   :  { %2815 = vmatprep.subr.bf16.mxu1 %v4346_v58  ;;  %v4409_v58 = vld [vmem:[#allocation8 + $0x504] ss:$16 sps:$4 sm:$0xff]  }
 0x16f   :  { %2775 = vmatpush1.bf16.msra.mxu0 %v4341_v59 }
 0x170   :  { %2816 = vmatpush1.bf16.msra.mxu1 %v4344_v60  ;;  %2776 = vmatprep.subr.bf16.mxu0 %v4349_v61  ;;  %v4412_v61 = vld [vmem:[#allocation8 + $0x704] ss:$16 sps:$4 sm:$0xff]  }
 0x171   :  { %2817 = vmatprep.subr.bf16.mxu1 %v4352_v62 }
 0x173   :  { %2777 = vmatpush1.bf16.msra.mxu0 %v4347_v63 }
 0x174   :  { %2818 = vmatpush1.bf16.msra.mxu1 %v4350_v0  ;;  %2778 = vmatprep.subr.bf16.mxu0 %v4355_v1  ;;  %v4407_v1 = vld [vmem:[#allocation8 + $0x500] ss:$16 sps:$4 sm:$0xff]  }
 0x175   :  { %2819 = vmatprep.subr.bf16.mxu1 %v4358_v2 }
 0x177   :  { %2779 = vmatpush1.bf16.msra.mxu0 %v4353_v3 }
 0x178   :  { %2820 = vmatpush1.bf16.msra.mxu1 %v4356_v4  ;;  %2780 = vmatprep.subr.bf16.mxu0 %v4361_v5  ;;  %v4410_v4 = vld [vmem:[#allocation8 + $0x700] ss:$16 sps:$4 sm:$0xff]  }
 0x179   :  { %2821 = vmatprep.subr.bf16.mxu1 %v4364_v6 }
 0x17b   :  { %2781 = vmatpush1.bf16.msra.mxu0 %v4359_v7  ;;  %v4415_v7 = vld [vmem:[#allocation8 + $0xec] ss:$16 sps:$4 sm:$0xff]  }
 0x17c   :  { %2822 = vmatpush1.bf16.msra.mxu1 %v4362_v8  ;;  %2782 = vmatprep.subr.bf16.mxu0 %v4367_v16 }
 0x17d   :  { %2823 = vmatprep.subr.bf16.mxu1 %v4370_v17 }
 0x17f   :  { %2783 = vmatpush2.bf16.msra.mxu0 %v4365_v18  ;;  %v4418_v18 = vld [vmem:[#allocation8 + $0x2ec] ss:$16 sps:$4 sm:$0xff]  }
 0x180   :  { %2824 = vmatpush2.bf16.msra.mxu1 %v4368_v19  ;;  %2784 = vmatprep.subr.bf16.mxu0 %v4373_v20 }
 0x181   :  { %2825 = vmatprep.subr.bf16.mxu1 %v4376_v21 }
 0x183   :  { %2785 = vmatpush2.bf16.msra.mxu0 %v4371_v22 }
 0x184   :  { %2826 = vmatpush2.bf16.msra.mxu1 %v4374_v13  ;;  %2786 = vmatprep.subr.bf16.mxu0 %v4379_v53  ;;  %v4413_v53 = vld [vmem:[#allocation8 + $0xe8] ss:$16 sps:$4 sm:$0xff]  }
 0x185   :  { %2827 = vmatprep.subr.bf16.mxu1 %v4382_v23 }
 0x187   :  { %2787 = vmatpush2.bf16.msra.mxu0 %v4377_v24 }
 0x188   :  { %2828 = vmatpush2.bf16.msra.mxu1 %v4380_v25  ;;  %2788 = vmatprep.subr.bf16.mxu0 %v4385_v26  ;;  %v4416_v25 = vld [vmem:[#allocation8 + $0x2e8] ss:$16 sps:$4 sm:$0xff]  }
 0x189   :  { %2829 = vmatprep.subr.bf16.mxu1 %v4388_v27  ;;  %v4421_v27 = vld [vmem:[#allocation8 + $0xcc] ss:$16 sps:$4 sm:$0xff]  }
 0x18b   :  { %2789 = vmatpush2.bf16.msra.mxu0 %v4383_v28  ;;  %v4424_v28 = vld [vmem:[#allocation8 + $0x2cc] ss:$16 sps:$4 sm:$0xff]  }
 0x18c   :  { %2830 = vmatpush2.bf16.msra.mxu1 %v4386_v29  ;;  %2790 = vmatprep.subr.bf16.mxu0 %v4391_v30  ;;  %v4419_v29 = vld [vmem:[#allocation8 + $0xc8] ss:$16 sps:$4 sm:$0xff]  }
 0x18d   :  { %2831 = vmatprep.subr.bf16.mxu1 %v4394_v31  ;;  %v4422_v30 = vld [vmem:[#allocation8 + $0x2c8] ss:$16 sps:$4 sm:$0xff]   ;;  %v4427_v31 = vld [vmem:[#allocation8 + $0xac] ss:$16 sps:$4 sm:$0xff]  }
 0x18f   :  { %2791 = vmatpush2.bf16.msra.mxu0 %v4389_v32  ;;  %v4430_v32 = vld [vmem:[#allocation8 + $0x2ac] ss:$16 sps:$4 sm:$0xff]  }
 0x190   :  { %2832 = vmatpush2.bf16.msra.mxu1 %v4392_v33  ;;  %2792 = vmatprep.subr.bf16.mxu0 %v4397_v34  ;;  %v4425_v33 = vld [vmem:[#allocation8 + $0xa8] ss:$16 sps:$4 sm:$0xff]  }
 0x191   :  { %2833 = vmatprep.subr.bf16.mxu1 %v4400_v36  ;;  %v4428_v34 = vld [vmem:[#allocation8 + $0x2a8] ss:$16 sps:$4 sm:$0xff]   ;;  %v4436_v36 = vld [vmem:[#allocation8 + $0x28c] ss:$16 sps:$4 sm:$0xff]  }
 0x193   :  { %2793 = vmatpush2.bf16.msra.mxu0 %v4395_v57  ;;  %v1046_v50 = vpop.f32.mrf.mxu0  ;;  %v1087_v55 = vpop.f32.mrf.mxu1  ;;  %v4442_v57 = vld [vmem:[#allocation8 + $0x26c] ss:$16 sps:$4 sm:$0xff]  }
 0x194   :  { %2834 = vmatpush2.bf16.msra.mxu1 %v4398_v44  ;;  %v1047_v54 = vadd.f32 %v1046_v50, %v262_v45  ;;  %2794 = vmatprep.subr.bf16.mxu0 %v4403_v46  ;;  %v1088_v59 = vadd.f32 %v1087_v55, %v270_v47  ;;  %v4445_v44 = vld [vmem:[#allocation8 + $0x4c] ss:$16 sps:$4 sm:$0xff]   ;;  %v4443_v46 = vld [vmem:[#allocation8 + $0x48] ss:$16 sps:$4 sm:$0xff]  }
 0x195   :  { %v1048_v60 = vpop.f32.mrf.mxu0  ;;  %2835 = vmatprep.subr.bf16.mxu1 %v4406_v48  ;;  %v1089_v0 = vpop.f32.mrf.mxu1  ;;  %v4448_v45 = vld [vmem:[#allocation8 + $0x24c] ss:$16 sps:$4 sm:$0xff]   ;;  %v4446_v47 = vld [vmem:[#allocation8 + $0x248] ss:$16 sps:$4 sm:$0xff]  }
 0x196   :  { %vm1098_vm4 = vcmp.gt.f32.partialorder %v1047_v54, 0.0  ;;  %v1106_v62 = vmul.f32 0.2, %v1047_v54  ;;  %v1049_v63 = vadd.f32 %v1048_v60, %v266_v49  ;;  %vm1100_vm5 = vcmp.gt.f32.partialorder %v1088_v59, 0.0  ;;  %v4451_v48 = vld [vmem:[#allocation8 + $0x2c] ss:$16 sps:$4 sm:$0xff]  }
 0x197   :  { %v1108_v2 = vmul.f32 0.2, %v1088_v59  ;;  %v1090_v3 = vadd.f32 %v1089_v0, %v274_v51  ;;  %2795 = vmatpush2.bf16.msra.mxu0 %v4401_v52  ;;  %v1050_v11 = vpop.f32.mrf.mxu0  ;;  %v1091_v6 = vpop.f32.mrf.mxu1  ;;  %v4454_v49 = vld [vmem:[#allocation8 + $0x22c] ss:$16 sps:$4 sm:$0xff]   ;;  %v4449_v50 = vld [vmem:[#allocation8 + $0x28] ss:$16 sps:$4 sm:$0xff]  }
 0x198   :  { %vm1099_vm6 = vcmp.gt.f32.partialorder %v1049_v63, 0.0  ;;  %v1107_v5 = vmul.f32 0.2, %v1049_v63  ;;  %2836 = vmatpush2.bf16.msra.mxu1 %v4404_v56  ;;  %2796 = vmatprep.subr.bf16.mxu0 %v4409_v58  ;;  %v1114_v8 = vsel %vm1098_vm4, %v1047_v54, %v1106_v62  ;;  %v4452_v51 = vld [vmem:[#allocation8 + $0x228] ss:$16 sps:$4 sm:$0xff]  }
 0x199   :  { %vm1101_vm7 = vcmp.gt.f32.partialorder %v1090_v3, 0.0  ;;  %v1109_v16 = vmul.f32 0.2, %v1090_v3  ;;  %v1051_v17 = vpop.f32.mrf.mxu0  ;;  %2837 = vmatprep.subr.bf16.mxu1 %v4412_v61  ;;  %v1116_v19 = vsel %vm1100_vm5, %v1088_v59, %v1108_v2  ;;  %v1092_v20 = vpop.f32.mrf.mxu1  ;;  %v5018_v23 = vpack.c.bf16 %v1114_v8, %v1114_v8  ;;  %v4457_v52 = vld [vmem:[#allocation8 + $0xc] ss:$16 sps:$4 sm:$0xff]  }
 0x19a   :  { %v1115_v21 = vsel %vm1099_vm6, %v1049_v63, %v1107_v5  ;;  %v5022_v26 = vpack.c.bf16 %v1116_v19, %v1116_v19  ;;  %v4460_v54 = vld [vmem:[#allocation8 + $0x20c] ss:$16 sps:$4 sm:$0xff]   ;;  %v4455_v55 = vld [vmem:[#allocation8 + $0x8] ss:$16 sps:$4 sm:$0xff]  }
 0x19b   :  { %2797 = vmatpush2.bf16.msra.mxu0 %v4407_v1  ;;  %v5016_v22 = vpack.c.bf16 %v1115_v21, %v1115_v21  ;;  %v1117_v13 = vsel %vm1101_vm7, %v1090_v3, %v1109_v16  ;;  %v4458_v56 = vld [vmem:[#allocation8 + $0x208] ss:$16 sps:$4 sm:$0xff]   ;;  %v4463_v58 = vld [vmem:[#allocation8 + $0x1ec] ss:$16 sps:$4 sm:$0xff]  }
 0x19c   :  { %2838 = vmatpush2.bf16.msra.mxu1 %v4410_v4  ;;  %v5020_v24 = vpack.c.bf16 %v1117_v13, %v1117_v13  ;;  %2848 = vmatprep.subr.bf16.mxu0 %v4415_v7  ;;  %v4466_v59 = vld [vmem:[#allocation8 + $0x3ec] ss:$16 sps:$4 sm:$0xff]   ;;  %v4461_v60 = vld [vmem:[#allocation8 + $0x1e8] ss:$16 sps:$4 sm:$0xff]  }
 0x19d   :  { %2798 = vmatprep.mubr.bf16.mxu0 %v5016_v22  ;;  %2889 = vmatprep.subr.bf16.mxu1 %v4418_v18  ;;  %v4464_v61 = vld [vmem:[#allocation8 + $0x3e8] ss:$16 sps:$4 sm:$0xff]   ;;  %v4469_v62 = vld [vmem:[#allocation8 + $0x1cc] ss:$16 sps:$4 sm:$0xff]  }
 0x19e   :  { %2839 = vmatprep.mubr.bf16.mxu1 %v5020_v24  ;;  %2799 = vmatmul.mubr.bf16.vlgmr.msra.gmra.mxu0 %v5018_v23  ;;  %v4472_v63 = vld [vmem:[#allocation8 + $0x3cc] ss:$16 sps:$4 sm:$0xff]   ;;  %v4467_v0 = vld [vmem:[#allocation8 + $0x1c8] ss:$16 sps:$4 sm:$0xff]  }
 0x19f   :  { %2840 = vmatmul.mubr.bf16.vlgmr.msra.gmra.mxu1 %v5022_v26  ;;  %2849 = vmatpush1.bf16.msra.mxu0 %v4413_v53  ;;  %v4470_v1 = vld [vmem:[#allocation8 + $0x3c8] ss:$16 sps:$4 sm:$0xff]   ;;  %v4475_v2 = vld [vmem:[#allocation8 + $0x1ac] ss:$16 sps:$4 sm:$0xff]  }
 0x1a0   :  { %2890 = vmatpush1.bf16.msra.mxu1 %v4416_v25  ;;  %2880 = vmatprep.mubr.bf16.mxu0 %v4994_v37  ;;  %v4434_v37 = vld [vmem:[#allocation8 + $0x288] ss:$16 sps:$4 sm:$0xff]   ;;  %v4478_v3 = vld [vmem:[#allocation8 + $0x3ac] ss:$16 sps:$4 sm:$0xff]  }
 0x1a1   :  { %2921 = vmatprep.mubr.bf16.mxu1 %v4998_v41  ;;  %2850 = vmatprep.subr.bf16.mxu0 %v4421_v27  ;;  %v4437_v41 = vld [vmem:[#allocation8 + $0x68] ss:$16 sps:$4 sm:$0xff]   ;;  %v4481_v5 = vld [vmem:[#allocation8 + $0x18c] ss:$16 sps:$4 sm:$0xff]  }
 0x1a2   :  { %2891 = vmatprep.subr.bf16.mxu1 %v4424_v28  ;;  %v4473_v11 = vld [vmem:[#allocation8 + $0x1a8] ss:$16 sps:$4 sm:$0xff]   ;;  %v4484_v6 = vld [vmem:[#allocation8 + $0x38c] ss:$16 sps:$4 sm:$0xff]  }
 0x1a3   :  { %2851 = vmatpush1.bf16.msra.mxu0 %v4419_v29  ;;  %v4476_v4 = vld [vmem:[#allocation8 + $0x3a8] ss:$16 sps:$4 sm:$0xff]   ;;  %v4487_v16 = vld [vmem:[#allocation8 + $0x16c] ss:$16 sps:$4 sm:$0xff]  }
 0x1a4   :  { %2892 = vmatpush1.bf16.msra.mxu1 %v4422_v30  ;;  %2852 = vmatprep.subr.bf16.mxu0 %v4427_v31  ;;  %v4479_v7 = vld [vmem:[#allocation8 + $0x188] ss:$16 sps:$4 sm:$0xff]   ;;  %v4490_v17 = vld [vmem:[#allocation8 + $0x36c] ss:$16 sps:$4 sm:$0xff]  }
 0x1a5   :  { %2893 = vmatprep.subr.bf16.mxu1 %v4430_v32  ;;  %v4482_v8 = vld [vmem:[#allocation8 + $0x388] ss:$16 sps:$4 sm:$0xff]   ;;  %v4493_v20 = vld [vmem:[#allocation8 + $0x14c] ss:$16 sps:$4 sm:$0xff]  }
 0x1a6   :  { %v4485_v18 = vld [vmem:[#allocation8 + $0x168] ss:$16 sps:$4 sm:$0xff]   ;;  %v4496_v21 = vld [vmem:[#allocation8 + $0x34c] ss:$16 sps:$4 sm:$0xff]  }
 0x1a7   :  { %2853 = vmatpush1.bf16.msra.mxu0 %v4425_v33  ;;  %v4488_v19 = vld [vmem:[#allocation8 + $0x368] ss:$16 sps:$4 sm:$0xff]   ;;  %v4499_v25 = vld [vmem:[#allocation8 + $0x12c] ss:$16 sps:$4 sm:$0xff]  }
 0x1a8   :  { %2894 = vmatpush1.bf16.msra.mxu1 %v4428_v34  ;;  %2854 = vmatprep.subr.bf16.mxu0 %v4433_v35  ;;  %v4491_v13 = vld [vmem:[#allocation8 + $0x148] ss:$16 sps:$4 sm:$0xff]   ;;  %v4502_v27 = vld [vmem:[#allocation8 + $0x32c] ss:$16 sps:$4 sm:$0xff]  }
 0x1a9   :  { %2895 = vmatprep.subr.bf16.mxu1 %v4436_v36  ;;  %v4494_v53 = vld [vmem:[#allocation8 + $0x348] ss:$16 sps:$4 sm:$0xff]   ;;  %v4505_v30 = vld [vmem:[#allocation8 + $0x10c] ss:$16 sps:$4 sm:$0xff]  }
 0x1aa   :  { %v4497_v28 = vld [vmem:[#allocation8 + $0x128] ss:$16 sps:$4 sm:$0xff]   ;;  %v4508_v31 = vld [vmem:[#allocation8 + $0x30c] ss:$16 sps:$4 sm:$0xff]  }
 0x1ab   :  { %2855 = vmatpush1.bf16.msra.mxu0 %v4431_v38  ;;  %v4500_v29 = vld [vmem:[#allocation8 + $0x328] ss:$16 sps:$4 sm:$0xff]   ;;  %v4511_v34 = vld [vmem:[#allocation8 + $0x4ec] ss:$16 sps:$4 sm:$0xff]  }
 0x1ac   :  { %2896 = vmatpush1.bf16.msra.mxu1 %v4434_v37  ;;  %2856 = vmatprep.subr.bf16.mxu0 %v4439_v39  ;;  %v4503_v32 = vld [vmem:[#allocation8 + $0x108] ss:$16 sps:$4 sm:$0xff]   ;;  %v4514_v35 = vld [vmem:[#allocation8 + $0x6ec] ss:$16 sps:$4 sm:$0xff]  }
 0x1ad   :  { %2897 = vmatprep.subr.bf16.mxu1 %v4442_v57  ;;  %v4506_v33 = vld [vmem:[#allocation8 + $0x308] ss:$16 sps:$4 sm:$0xff]   ;;  %v4517_v37 = vld [vmem:[#allocation8 + $0x4cc] ss:$16 sps:$4 sm:$0xff]  }
 0x1ae   :  { %v4509_v36 = vld [vmem:[#allocation8 + $0x4e8] ss:$16 sps:$4 sm:$0xff]   ;;  %v4520_v39 = vld [vmem:[#allocation8 + $0x6cc] ss:$16 sps:$4 sm:$0xff]  }
 0x1af   :  { %2857 = vmatpush1.bf16.msra.mxu0 %v4437_v41  ;;  %v4512_v38 = vld [vmem:[#allocation8 + $0x6e8] ss:$16 sps:$4 sm:$0xff]  }
 0x1b0   :  { %2898 = vmatpush1.bf16.msra.mxu1 %v4440_v42  ;;  %2858 = vmatprep.subr.bf16.mxu0 %v4445_v44  ;;  %v4515_v57 = vld [vmem:[#allocation8 + $0x4c8] ss:$16 sps:$4 sm:$0xff]   ;;  %v4523_v42 = vld [vmem:[#allocation8 + $0x4ac] ss:$16 sps:$4 sm:$0xff]  }
 0x1b1   :  { %2899 = vmatprep.subr.bf16.mxu1 %v4448_v45  ;;  %v4518_v41 = vld [vmem:[#allocation8 + $0x6c8] ss:$16 sps:$4 sm:$0xff]   ;;  %v4526_v44 = vld [vmem:[#allocation8 + $0x6ac] ss:$16 sps:$4 sm:$0xff]  }
 0x1b2   :  { %v4521_v45 = vld [vmem:[#allocation8 + $0x4a8] ss:$16 sps:$4 sm:$0xff]  }
 0x1b3   :  { %2859 = vmatpush1.bf16.msra.mxu0 %v4443_v46  ;;  %v4529_v46 = vld [vmem:[#allocation8 + $0x48c] ss:$16 sps:$4 sm:$0xff]  }
 0x1b4   :  { %2900 = vmatpush1.bf16.msra.mxu1 %v4446_v47  ;;  %2860 = vmatprep.subr.bf16.mxu0 %v4451_v48  ;;  %v4527_v47 = vld [vmem:[#allocation8 + $0x488] ss:$16 sps:$4 sm:$0xff]   ;;  %v4535_v48 = vld [vmem:[#allocation8 + $0x46c] ss:$16 sps:$4 sm:$0xff]  }
 0x1b5   :  { %2901 = vmatprep.subr.bf16.mxu1 %v4454_v49  ;;  %v4538_v49 = vld [vmem:[#allocation8 + $0x66c] ss:$16 sps:$4 sm:$0xff]  }
 0x1b7   :  { %2861 = vmatpush1.bf16.msra.mxu0 %v4449_v50  ;;  %v4536_v50 = vld [vmem:[#allocation8 + $0x668] ss:$16 sps:$4 sm:$0xff]  }
 0x1b8   :  { %2902 = vmatpush1.bf16.msra.mxu1 %v4452_v51  ;;  %2862 = vmatprep.subr.bf16.mxu0 %v4457_v52  ;;  %v4541_v51 = vld [vmem:[#allocation8 + $0x44c] ss:$16 sps:$4 sm:$0xff]  }
 0x1b9   :  { %2903 = vmatprep.subr.bf16.mxu1 %v4460_v54  ;;  %v4544_v52 = vld [vmem:[#allocation8 + $0x64c] ss:$16 sps:$4 sm:$0xff]   ;;  %v4539_v54 = vld [vmem:[#allocation8 + $0x448] ss:$16 sps:$4 sm:$0xff]  }
 0x1bb   :  { %2863 = vmatpush1.bf16.msra.mxu0 %v4455_v55  ;;  %v4542_v55 = vld [vmem:[#allocation8 + $0x648] ss:$16 sps:$4 sm:$0xff]  }
 0x1bc   :  { %2904 = vmatpush1.bf16.msra.mxu1 %v4458_v56  ;;  %2864 = vmatprep.subr.bf16.mxu0 %v4463_v58  ;;  %v4547_v56 = vld [vmem:[#allocation8 + $0x42c] ss:$16 sps:$4 sm:$0xff]  }
 0x1bd   :  { %2905 = vmatprep.subr.bf16.mxu1 %v4466_v59  ;;  %v4550_v58 = vld [vmem:[#allocation8 + $0x62c] ss:$16 sps:$4 sm:$0xff]   ;;  %v4545_v59 = vld [vmem:[#allocation8 + $0x428] ss:$16 sps:$4 sm:$0xff]  }
 0x1bf   :  { %2865 = vmatpush2.bf16.msra.mxu0 %v4461_v60  ;;  %v4548_v60 = vld [vmem:[#allocation8 + $0x628] ss:$16 sps:$4 sm:$0xff]  }
 0x1c0   :  { %2906 = vmatpush2.bf16.msra.mxu1 %v4464_v61  ;;  %2866 = vmatprep.subr.bf16.mxu0 %v4469_v62  ;;  %v4553_v61 = vld [vmem:[#allocation8 + $0x40c] ss:$16 sps:$4 sm:$0xff]  }
 0x1c1   :  { %2907 = vmatprep.subr.bf16.mxu1 %v4472_v63  ;;  %v4556_v62 = vld [vmem:[#allocation8 + $0x60c] ss:$16 sps:$4 sm:$0xff]   ;;  %v4551_v63 = vld [vmem:[#allocation8 + $0x408] ss:$16 sps:$4 sm:$0xff]  }
 0x1c3   :  { %2867 = vmatpush2.bf16.msra.mxu0 %v4467_v0  ;;  %v4554_v0 = vld [vmem:[#allocation8 + $0x608] ss:$16 sps:$4 sm:$0xff]  }
 0x1c4   :  { %2908 = vmatpush2.bf16.msra.mxu1 %v4470_v1  ;;  %2868 = vmatprep.subr.bf16.mxu0 %v4475_v2  ;;  %v4559_v1 = vld [vmem:[#allocation8 + $0x5ec] ss:$16 sps:$4 sm:$0xff]  }
 0x1c5   :  { %2909 = vmatprep.subr.bf16.mxu1 %v4478_v3  ;;  %v4562_v2 = vld [vmem:[#allocation8 + $0x7ec] ss:$16 sps:$4 sm:$0xff]   ;;  %v4557_v3 = vld [vmem:[#allocation8 + $0x5e8] ss:$16 sps:$4 sm:$0xff]  }
 0x1c7   :  { %2869 = vmatpush2.bf16.msra.mxu0 %v4473_v11  ;;  %v4560_v11 = vld [vmem:[#allocation8 + $0x7e8] ss:$16 sps:$4 sm:$0xff]  }
 0x1c8   :  { %2910 = vmatpush2.bf16.msra.mxu1 %v4476_v4  ;;  %2870 = vmatprep.subr.bf16.mxu0 %v4481_v5  ;;  %v4565_v4 = vld [vmem:[#allocation8 + $0x5cc] ss:$16 sps:$4 sm:$0xff]  }
 0x1c9   :  { %2911 = vmatprep.subr.bf16.mxu1 %v4484_v6  ;;  %v4568_v5 = vld [vmem:[#allocation8 + $0x7cc] ss:$16 sps:$4 sm:$0xff]   ;;  %v4563_v6 = vld [vmem:[#allocation8 + $0x5c8] ss:$16 sps:$4 sm:$0xff]  }
 0x1cb   :  { %2871 = vmatpush2.bf16.msra.mxu0 %v4479_v7  ;;  %v4566_v7 = vld [vmem:[#allocation8 + $0x7c8] ss:$16 sps:$4 sm:$0xff]  }
 0x1cc   :  { %2912 = vmatpush2.bf16.msra.mxu1 %v4482_v8  ;;  %2872 = vmatprep.subr.bf16.mxu0 %v4487_v16  ;;  %v4571_v8 = vld [vmem:[#allocation8 + $0x5ac] ss:$16 sps:$4 sm:$0xff]  }
 0x1cd   :  { %2913 = vmatprep.subr.bf16.mxu1 %v4490_v17  ;;  %v4574_v16 = vld [vmem:[#allocation8 + $0x7ac] ss:$16 sps:$4 sm:$0xff]   ;;  %v4569_v17 = vld [vmem:[#allocation8 + $0x5a8] ss:$16 sps:$4 sm:$0xff]  }
 0x1cf   :  { %2873 = vmatpush2.bf16.msra.mxu0 %v4485_v18  ;;  %v4572_v18 = vld [vmem:[#allocation8 + $0x7a8] ss:$16 sps:$4 sm:$0xff]  }
 0x1d0   :  { %2914 = vmatpush2.bf16.msra.mxu1 %v4488_v19  ;;  %2874 = vmatprep.subr.bf16.mxu0 %v4493_v20  ;;  %v4577_v19 = vld [vmem:[#allocation8 + $0x58c] ss:$16 sps:$4 sm:$0xff]  }
 0x1d1   :  { %2915 = vmatprep.subr.bf16.mxu1 %v4496_v21  ;;  %v4580_v20 = vld [vmem:[#allocation8 + $0x78c] ss:$16 sps:$4 sm:$0xff]   ;;  %v4575_v21 = vld [vmem:[#allocation8 + $0x588] ss:$16 sps:$4 sm:$0xff]  }
 0x1d3   :  { %2875 = vmatpush2.bf16.msra.mxu0 %v4491_v13  ;;  %v4578_v13 = vld [vmem:[#allocation8 + $0x788] ss:$16 sps:$4 sm:$0xff]  }
 0x1d4   :  { %2916 = vmatpush2.bf16.msra.mxu1 %v4494_v53  ;;  %2876 = vmatprep.subr.bf16.mxu0 %v4499_v25  ;;  %v4583_v53 = vld [vmem:[#allocation8 + $0x56c] ss:$16 sps:$4 sm:$0xff]  }
 0x1d5   :  { %2917 = vmatprep.subr.bf16.mxu1 %v4502_v27  ;;  %v4586_v25 = vld [vmem:[#allocation8 + $0x76c] ss:$16 sps:$4 sm:$0xff]   ;;  %v4581_v27 = vld [vmem:[#allocation8 + $0x568] ss:$16 sps:$4 sm:$0xff]  }
 0x1d7   :  { %2877 = vmatpush2.bf16.msra.mxu0 %v4497_v28  ;;  %v4584_v28 = vld [vmem:[#allocation8 + $0x768] ss:$16 sps:$4 sm:$0xff]  }
 0x1d8   :  { %2918 = vmatpush2.bf16.msra.mxu1 %v4500_v29  ;;  %2878 = vmatprep.subr.bf16.mxu0 %v4505_v30  ;;  %v4589_v29 = vld [vmem:[#allocation8 + $0x54c] ss:$16 sps:$4 sm:$0xff]  }
 0x1d9   :  { %2919 = vmatprep.subr.bf16.mxu1 %v4508_v31  ;;  %v4592_v30 = vld [vmem:[#allocation8 + $0x74c] ss:$16 sps:$4 sm:$0xff]   ;;  %v4587_v31 = vld [vmem:[#allocation8 + $0x548] ss:$16 sps:$4 sm:$0xff]  }
 0x1db   :  { %2879 = vmatpush2.bf16.msra.mxu0 %v4503_v32  ;;  %v4590_v32 = vld [vmem:[#allocation8 + $0x748] ss:$16 sps:$4 sm:$0xff]  }
 0x1dc   :  { %2920 = vmatpush2.bf16.msra.mxu1 %v4506_v33  ;;  %2930 = vmatprep.subr.bf16.mxu0 %v4511_v34  ;;  %v4595_v33 = vld [vmem:[#allocation8 + $0x52c] ss:$16 sps:$4 sm:$0xff]  }
 0x1dd   :  { %2971 = vmatprep.subr.bf16.mxu1 %v4514_v35  ;;  %v4598_v34 = vld [vmem:[#allocation8 + $0x72c] ss:$16 sps:$4 sm:$0xff]   ;;  %v4593_v35 = vld [vmem:[#allocation8 + $0x528] ss:$16 sps:$4 sm:$0xff]  }
 0x1de   :  { %2881 = vmatmul.mubr.bf16.vlgmr.msra.gmra.mxu0 %v4996_v40  ;;  %v4524_v40 = vld [vmem:[#allocation8 + $0x6a8] ss:$16 sps:$4 sm:$0xff]  }
 0x1df   :  { %2922 = vmatmul.mubr.bf16.vlgmr.msra.gmra.mxu1 %v5000_v43  ;;  %2931 = vmatpush1.bf16.msra.mxu0 %v4509_v36  ;;  %v4532_v43 = vld [vmem:[#allocation8 + $0x68c] ss:$16 sps:$4 sm:$0xff]   ;;  %v4596_v36 = vld [vmem:[#allocation8 + $0x728] ss:$16 sps:$4 sm:$0xff]  }
 0x1e0   :  { %2962 = vmatprep.mubr.bf16.mxu0 %v5016_v22  ;;  %2972 = vmatpush1.bf16.msra.mxu1 %v4512_v38  ;;  %v4530_v22 = vld [vmem:[#allocation8 + $0x688] ss:$16 sps:$4 sm:$0xff]   ;;  %v4601_v38 = vld [vmem:[#allocation8 + $0x50c] ss:$16 sps:$4 sm:$0xff]  }
 0x1e1   :  { %3003 = vmatprep.mubr.bf16.mxu1 %v5020_v24  ;;  %2932 = vmatprep.subr.bf16.mxu0 %v4517_v37  ;;  %v4533_v24 = vld [vmem:[#allocation8 + $0x468] ss:$16 sps:$4 sm:$0xff]   ;;  %v4604_v37 = vld [vmem:[#allocation8 + $0x70c] ss:$16 sps:$4 sm:$0xff]  }
 0x1e2   :  { %2973 = vmatprep.subr.bf16.mxu1 %v4520_v39  ;;  %v4599_v39 = vld [vmem:[#allocation8 + $0x508] ss:$16 sps:$4 sm:$0xff]  }
 0x1e3   :  { %2933 = vmatpush1.bf16.msra.mxu0 %v4515_v57  ;;  %v4602_v57 = vld [vmem:[#allocation8 + $0x708] ss:$16 sps:$4 sm:$0xff]  }
 0x1e4   :  { %2974 = vmatpush1.bf16.msra.mxu1 %v4518_v41  ;;  %2934 = vmatprep.subr.bf16.mxu0 %v4523_v42  ;;  %v4607_v41 = vld [vmem:[#allocation10 + $0x74] ss:$8 sps:$4 sm:$0xff]   ;;  %v4605_v42 = vld [vmem:[#allocation10 + $0x70] ss:$8 sps:$4 sm:$0xff]  }
 0x1e5   :  { %2975 = vmatprep.subr.bf16.mxu1 %v4526_v44  ;;  %v4610_v44 = vld [vmem:[#allocation10 + $0x64] ss:$8 sps:$4 sm:$0xff]  }
 0x1e7   :  { %2935 = vmatpush1.bf16.msra.mxu0 %v4521_v45 }
 0x1e8   :  { %2976 = vmatpush1.bf16.msra.mxu1 %v4524_v40  ;;  %2936 = vmatprep.subr.bf16.mxu0 %v4529_v46  ;;  %v4608_v46 = vld [vmem:[#allocation10 + $0x60] ss:$8 sps:$4 sm:$0xff]  }
 0x1e9   :  { %2977 = vmatprep.subr.bf16.mxu1 %v4532_v43 }
 0x1eb   :  { %2937 = vmatpush1.bf16.msra.mxu0 %v4527_v47  ;;  %v4613_v47 = vld [vmem:[#allocation10 + $0x54] ss:$8 sps:$4 sm:$0xff]  }
 0x1ec   :  { %2978 = vmatpush1.bf16.msra.mxu1 %v4530_v22  ;;  %2938 = vmatprep.subr.bf16.mxu0 %v4535_v48 }
 0x1ed   :  { %2979 = vmatprep.subr.bf16.mxu1 %v4538_v49 }
 0x1ef   :  { %2939 = vmatpush1.bf16.msra.mxu0 %v4533_v24  ;;  %v4611_v24 = vld [vmem:[#allocation10 + $0x50] ss:$8 sps:$4 sm:$0xff]  }
 0x1f0   :  { %2980 = vmatpush1.bf16.msra.mxu1 %v4536_v50  ;;  %2940 = vmatprep.subr.bf16.mxu0 %v4541_v51 }
 0x1f1   :  { %2981 = vmatprep.subr.bf16.mxu1 %v4544_v52  ;;  %v4653_v52 = vld [vmem:[#allocation10 + $0x170] ss:$8 sps:$4 sm:$0xff]  }
 0x1f3   :  { %2941 = vmatpush1.bf16.msra.mxu0 %v4539_v54  ;;  %v4658_v54 = vld [vmem:[#allocation10 + $0x164] ss:$8 sps:$4 sm:$0xff]  }
 0x1f4   :  { %2982 = vmatpush1.bf16.msra.mxu1 %v4542_v55  ;;  %2942 = vmatprep.subr.bf16.mxu0 %v4547_v56  ;;  %v4614_v55 = vld [vmem:[#allocation10 + $0x40] ss:$8 sps:$4 sm:$0xff]   ;;  %v4619_v56 = vld [vmem:[#allocation10 + $0x34] ss:$8 sps:$4 sm:$0xff]  }
 0x1f5   :  { %2983 = vmatprep.subr.bf16.mxu1 %v4550_v58  ;;  %v4656_v58 = vld [vmem:[#allocation10 + $0x160] ss:$8 sps:$4 sm:$0xff]  }
 0x1f7   :  { %2943 = vmatpush1.bf16.msra.mxu0 %v4545_v59  ;;  %v4661_v59 = vld [vmem:[#allocation10 + $0x154] ss:$8 sps:$4 sm:$0xff]  }
 0x1f8   :  { %2984 = vmatpush1.bf16.msra.mxu1 %v4548_v60  ;;  %2944 = vmatprep.subr.bf16.mxu0 %v4553_v61  ;;  %v4617_v60 = vld [vmem:[#allocation10 + $0x30] ss:$8 sps:$4 sm:$0xff]   ;;  %v4622_v61 = vld [vmem:[#allocation10 + $0x24] ss:$8 sps:$4 sm:$0xff]  }
 0x1f9   :  { %2985 = vmatprep.subr.bf16.mxu1 %v4556_v62  ;;  %v4659_v62 = vld [vmem:[#allocation10 + $0x150] ss:$8 sps:$4 sm:$0xff]  }
 0x1fb   :  { %2945 = vmatpush1.bf16.msra.mxu0 %v4551_v63  ;;  %v4664_v63 = vld [vmem:[#allocation10 + $0x144] ss:$8 sps:$4 sm:$0xff]  }
 0x1fc   :  { %2986 = vmatpush1.bf16.msra.mxu1 %v4554_v0  ;;  %2946 = vmatprep.subr.bf16.mxu0 %v4559_v1  ;;  %v4620_v0 = vld [vmem:[#allocation10 + $0x20] ss:$8 sps:$4 sm:$0xff]   ;;  %v4625_v1 = vld [vmem:[#allocation10 + $0x14] ss:$8 sps:$4 sm:$0xff]  }
 0x1fd   :  { %2987 = vmatprep.subr.bf16.mxu1 %v4562_v2  ;;  %v4662_v2 = vld [vmem:[#allocation10 + $0x140] ss:$8 sps:$4 sm:$0xff]  }
 0x1ff   :  { %2947 = vmatpush2.bf16.msra.mxu0 %v4557_v3  ;;  %v4667_v3 = vld [vmem:[#allocation10 + $0x134] ss:$8 sps:$4 sm:$0xff]  }
 0x200   :  { %2988 = vmatpush2.bf16.msra.mxu1 %v4560_v11  ;;  %2948 = vmatprep.subr.bf16.mxu0 %v4565_v4  ;;  %v4623_v11 = vld [vmem:[#allocation10 + $0x10] ss:$8 sps:$4 sm:$0xff]   ;;  %v4628_v4 = vld [vmem:[#allocation10 + $0x4] ss:$8 sps:$4 sm:$0xff]  }
 0x201   :  { %2989 = vmatprep.subr.bf16.mxu1 %v4568_v5  ;;  %v4665_v5 = vld [vmem:[#allocation10 + $0x130] ss:$8 sps:$4 sm:$0xff]  }
 0x203   :  { %2949 = vmatpush2.bf16.msra.mxu0 %v4563_v6  ;;  %v4670_v6 = vld [vmem:[#allocation10 + $0x124] ss:$8 sps:$4 sm:$0xff]  }
 0x204   :  { %2990 = vmatpush2.bf16.msra.mxu1 %v4566_v7  ;;  %2950 = vmatprep.subr.bf16.mxu0 %v4571_v8  ;;  %v4626_v7 = vld [vmem:[#allocation10] ss:$8 sps:$4 sm:$0xff]   ;;  %v4631_v8 = vld [vmem:[#allocation10 + $0xf4] ss:$8 sps:$4 sm:$0xff]  }
 0x205   :  { %2991 = vmatprep.subr.bf16.mxu1 %v4574_v16  ;;  %v4668_v16 = vld [vmem:[#allocation10 + $0x120] ss:$8 sps:$4 sm:$0xff]  }
 0x207   :  { %2951 = vmatpush2.bf16.msra.mxu0 %v4569_v17  ;;  %v4673_v17 = vld [vmem:[#allocation10 + $0x114] ss:$8 sps:$4 sm:$0xff]  }
 0x208   :  { %2992 = vmatpush2.bf16.msra.mxu1 %v4572_v18  ;;  %2952 = vmatprep.subr.bf16.mxu0 %v4577_v19  ;;  %v4629_v18 = vld [vmem:[#allocation10 + $0xf0] ss:$8 sps:$4 sm:$0xff]   ;;  %v4634_v19 = vld [vmem:[#allocation10 + $0xe4] ss:$8 sps:$4 sm:$0xff]  }
 0x209   :  { %2993 = vmatprep.subr.bf16.mxu1 %v4580_v20  ;;  %v4671_v20 = vld [vmem:[#allocation10 + $0x110] ss:$8 sps:$4 sm:$0xff]  }
 0x20b   :  { %2953 = vmatpush2.bf16.msra.mxu0 %v4575_v21  ;;  %v4676_v21 = vld [vmem:[#allocation10 + $0x104] ss:$8 sps:$4 sm:$0xff]  }
 0x20c   :  { %2994 = vmatpush2.bf16.msra.mxu1 %v4578_v13  ;;  %2954 = vmatprep.subr.bf16.mxu0 %v4583_v53  ;;  %v4632_v13 = vld [vmem:[#allocation10 + $0xe0] ss:$8 sps:$4 sm:$0xff]   ;;  %v4637_v53 = vld [vmem:[#allocation10 + $0xd4] ss:$8 sps:$4 sm:$0xff]  }
 0x20d   :  { %2995 = vmatprep.subr.bf16.mxu1 %v4586_v25  ;;  %v4674_v25 = vld [vmem:[#allocation10 + $0x100] ss:$8 sps:$4 sm:$0xff]  }
 0x20f   :  { %2955 = vmatpush2.bf16.msra.mxu0 %v4581_v27  ;;  %v4679_v27 = vld [vmem:[#allocation10 + $0x1f4] ss:$8 sps:$4 sm:$0xff]  }
 0x210   :  { %2996 = vmatpush2.bf16.msra.mxu1 %v4584_v28  ;;  %2956 = vmatprep.subr.bf16.mxu0 %v4589_v29  ;;  %v4635_v28 = vld [vmem:[#allocation10 + $0xd0] ss:$8 sps:$4 sm:$0xff]   ;;  %v4640_v29 = vld [vmem:[#allocation10 + $0xc4] ss:$8 sps:$4 sm:$0xff]  }
 0x211   :  { %2997 = vmatprep.subr.bf16.mxu1 %v4592_v30  ;;  %v4677_v30 = vld [vmem:[#allocation10 + $0x1f0] ss:$8 sps:$4 sm:$0xff]  }
 0x213   :  { %2957 = vmatpush2.bf16.msra.mxu0 %v4587_v31  ;;  %v4682_v31 = vld [vmem:[#allocation10 + $0x1e4] ss:$8 sps:$4 sm:$0xff]  }
 0x214   :  { %2998 = vmatpush2.bf16.msra.mxu1 %v4590_v32  ;;  %2958 = vmatprep.subr.bf16.mxu0 %v4595_v33  ;;  %v4638_v32 = vld [vmem:[#allocation10 + $0xc0] ss:$8 sps:$4 sm:$0xff]   ;;  %v4643_v33 = vld [vmem:[#allocation10 + $0xb4] ss:$8 sps:$4 sm:$0xff]  }
 0x215   :  { %2999 = vmatprep.subr.bf16.mxu1 %v4598_v34  ;;  %v4680_v34 = vld [vmem:[#allocation10 + $0x1e0] ss:$8 sps:$4 sm:$0xff]  }
 0x217   :  { %2959 = vmatpush2.bf16.msra.mxu0 %v4593_v35  ;;  %v4685_v35 = vld [vmem:[#allocation10 + $0x1d4] ss:$8 sps:$4 sm:$0xff]  }
 0x218   :  { %3000 = vmatpush2.bf16.msra.mxu1 %v4596_v36  ;;  %2960 = vmatprep.subr.bf16.mxu0 %v4601_v38  ;;  %v4641_v36 = vld [vmem:[#allocation10 + $0xb0] ss:$8 sps:$4 sm:$0xff]   ;;  %v4646_v38 = vld [vmem:[#allocation10 + $0xa4] ss:$8 sps:$4 sm:$0xff]  }
 0x219   :  { %3001 = vmatprep.subr.bf16.mxu1 %v4604_v37  ;;  %v4683_v37 = vld [vmem:[#allocation10 + $0x1d0] ss:$8 sps:$4 sm:$0xff]  }
 0x21b   :  { %2961 = vmatpush2.bf16.msra.mxu0 %v4599_v39  ;;  %v4688_v39 = vld [vmem:[#allocation10 + $0x1c4] ss:$8 sps:$4 sm:$0xff]  }
 0x21c   :  { %3002 = vmatpush2.bf16.msra.mxu1 %v4602_v57  ;;  %3424 = vmatprep.subr.bf16.mxu0 %v4607_v41  ;;  %v4644_v57 = vld [vmem:[#allocation10 + $0xa0] ss:$8 sps:$4 sm:$0xff]   ;;  %v4649_v41 = vld [vmem:[#allocation10 + $0x94] ss:$8 sps:$4 sm:$0xff]  }
 0x21e   :  { %2963 = vmatmul.mubr.bf16.vlgmr.msra.gmra.mxu0 %v5018_v23  ;;  %v5035_v45 = vpop.f32.mrf.mxu0  ;;  %v4616_v23 = vld [vmem:[#allocation10 + $0x44] ss:$8 sps:$4 sm:$0xff]  }
 0x21f   :  { %3004 = vmatmul.mubr.bf16.vlgmr.msra.gmra.mxu1 %v5022_v26  ;;  %v5038_v40 = vpop.f32.mrf.mxu1  ;;  %3425 = vmatpush1.bf16.msra.mxu0 %v4605_v42  ;;  %v4655_v26 = vld [vmem:[#allocation10 + $0x174] ss:$8 sps:$4 sm:$0xff]   ;;  %v4686_v42 = vld [vmem:[#allocation10 + $0x1c0] ss:$8 sps:$4 sm:$0xff]  }
 0x220   :  { %v5040_v43 = vpop.f32.mrf.mxu0  ;;  %3426 = vmatprep.subr.bf16.mxu0 %v4610_v44  ;;  %3465 = vmatprep.subr.bf16.mxu1 %v4655_v26  ;;  %v4691_v44 = vld [vmem:[#allocation10 + $0x1b4] ss:$8 sps:$4 sm:$0xff]  }
 0x221   :  { %v5042_v22 = vpop.f32.mrf.mxu1  ;;  %3466 = vmatpush1.bf16.msra.mxu1 %v4653_v52 }
 0x222   :  { %v2722_v48 = vpop.f32.mrf.mxu0  ;;  %3467 = vmatprep.subr.bf16.mxu1 %v4658_v54 }
 0x223   :  { %v2763_v49 = vpop.f32.mrf.mxu1  ;;  %3427 = vmatpush1.bf16.msra.mxu0 %v4608_v46  ;;  %v5047_v46 = vld [vmem:[%s5078_s4] sm:$0xf]  ;;  %v4652_v48 = vld [vmem:[#allocation10 + $0x84] ss:$8 sps:$4 sm:$0xff]  }
 0x224   :  { %v2723_v50 = vpop.f32.mrf.mxu0  ;;  %3428 = vmatprep.subr.bf16.mxu0 %v4613_v47  ;;  %v4647_v47 = vld [vmem:[#allocation10 + $0x90] ss:$8 sps:$4 sm:$0xff]  }
 0x225   :  { %v2764_v51 = vpop.f32.mrf.mxu1  ;;  %3468 = vmatpush1.bf16.msra.mxu1 %v4656_v58  ;;  %v4689_v49 = vld [vmem:[#allocation10 + $0x1b0] ss:$8 sps:$4 sm:$0xff]   ;;  %v1391_v50 = vrot.slane %v5047_v46, %v4981_v14 }
 0x226   :  { %3469 = vmatprep.subr.bf16.mxu1 %v4661_v59  ;;  %v4694_v59 = vld [vmem:[#allocation10 + $0x1a4] ss:$8 sps:$4 sm:$0xff]  }
 0x227   :  { %3429 = vmatpush1.bf16.msra.mxu0 %v4611_v24  ;;  %v1387_v24 = vrot.slane %v5047_v46, %v4975_v10  ;;  %v2721_v52 = vadd.f32 %v5040_v43, %v1391_v50 }
 0x228   :  { %3430 = vmatprep.subr.bf16.mxu0 %v4616_v23  ;;  %v4650_v23 = vld [vmem:[#allocation10 + $0x80] ss:$8 sps:$4 sm:$0xff]  }
 0x229   :  { %3470 = vmatpush1.bf16.msra.mxu1 %v4659_v62  ;;  %v2719_v51 = vadd.f32 %v5035_v45, %v1387_v24 }
 0x22a   :  { %3471 = vmatprep.subr.bf16.mxu1 %v4664_v63 }
 0x22b   :  { %3431 = vmatpush1.bf16.msra.mxu0 %v4614_v55  ;;  %v2760_v26 = vadd.f32 %v5038_v40, %v2719_v51  ;;  %v2762_v55 = vadd.f32 %v5042_v22, %v2721_v52 }
 0x22c   :  { %3432 = vmatprep.subr.bf16.mxu0 %v4619_v56 }
 0x22d   :  { %3472 = vmatpush1.bf16.msra.mxu1 %v4662_v2 }
 0x22e   :  { %3473 = vmatprep.subr.bf16.mxu1 %v4667_v3  ;;  %v4697_v3 = vld [vmem:[#allocation10 + $0x194] ss:$8 sps:$4 sm:$0xff]  }
 0x22f   :  { %3433 = vmatpush1.bf16.msra.mxu0 %v4617_v60 }
 0x230   :  { %3434 = vmatprep.subr.bf16.mxu0 %v4622_v61  ;;  %v4692_v61 = vld [vmem:[#allocation10 + $0x1a0] ss:$8 sps:$4 sm:$0xff]  }
 0x231   :  { %3474 = vmatpush1.bf16.msra.mxu1 %v4665_v5 }
 0x232   :  { %3475 = vmatprep.subr.bf16.mxu1 %v4670_v6  ;;  %v4698_v6 = vld [vmem:[#allocation10 + $0x180] ss:$8 sps:$4 sm:$0xff]  }
 0x233   :  { %3435 = vmatpush1.bf16.msra.mxu0 %v4620_v0 }
 0x234   :  { %3436 = vmatprep.subr.bf16.mxu0 %v4625_v1 }
 0x235   :  { %3476 = vmatpush1.bf16.msra.mxu1 %v4668_v16 }
 0x236   :  { %3477 = vmatprep.subr.bf16.mxu1 %v4673_v17 }
 0x237   :  { %3437 = vmatpush1.bf16.msra.mxu0 %v4623_v11  ;;  %v4695_v11 = vld [vmem:[#allocation10 + $0x190] ss:$8 sps:$4 sm:$0xff]  }
 0x238   :  { %3438 = vmatprep.subr.bf16.mxu0 %v4628_v4 }
 0x239   :  { %3478 = vmatpush1.bf16.msra.mxu1 %v4671_v20 }
 0x23a   :  { %3479 = vmatprep.subr.bf16.mxu1 %v4676_v21 }
 0x23b   :  { %3439 = vmatpush1.bf16.msra.mxu0 %v4626_v7  ;;  %v4700_v7 = vld [vmem:[#allocation10 + $0x184] ss:$8 sps:$4 sm:$0xff]  }
 0x23c   :  { %3440 = vmatprep.subr.bf16.mxu0 %v4631_v8 }
 0x23d   :  { %3480 = vmatpush1.bf16.msra.mxu1 %v4674_v25 }
 0x23e   :  { %3481 = vmatprep.subr.bf16.mxu1 %v4679_v27 }
 0x23f   :  { %3441 = vmatpush2.bf16.msra.mxu0 %v4629_v18 }
 0x240   :  { %3442 = vmatprep.subr.bf16.mxu0 %v4634_v19 }
 0x241   :  { %3482 = vmatpush2.bf16.msra.mxu1 %v4677_v30  ;;  %v4703_v30 = vld [vmem:[#allocation11 + $0x70] sm:$0xff]  }
 0x242   :  { %3483 = vmatprep.subr.bf16.mxu1 %v4682_v31  ;;  %v4704_v31 = vld [vmem:[#allocation11 + $0x30] sm:$0xff]  }
 0x243   :  { %3443 = vmatpush2.bf16.msra.mxu0 %v4632_v13 }
 0x244   :  { %3444 = vmatprep.subr.bf16.mxu0 %v4637_v53 }
 0x245   :  { %3484 = vmatpush2.bf16.msra.mxu1 %v4680_v34  ;;  %v4707_v34 = vld [vmem:[#allocation11 + $0x60] sm:$0xff]  }
 0x246   :  { %3485 = vmatprep.subr.bf16.mxu1 %v4685_v35  ;;  %v4708_v35 = vld [vmem:[#allocation11 + $0x20] sm:$0xff]  }
 0x247   :  { %3445 = vmatpush2.bf16.msra.mxu0 %v4635_v28  ;;  %v4701_v28 = vld [vmem:[#allocation11 + $0x78] sm:$0xff]  }
 0x248   :  { %3446 = vmatprep.subr.bf16.mxu0 %v4640_v29  ;;  %v4702_v29 = vld [vmem:[#allocation11 + $0x38] sm:$0xff]  }
 0x249   :  { %3486 = vmatpush2.bf16.msra.mxu1 %v4683_v37  ;;  %v4711_v37 = vld [vmem:[#allocation11 + $0x50] sm:$0xff]  }
 0x24a   :  { %3487 = vmatprep.subr.bf16.mxu1 %v4688_v39  ;;  %v1395_v39 = vrot.slane %v5047_v46, %v253_v12 }
 0x24b   :  { %3447 = vmatpush2.bf16.msra.mxu0 %v4638_v32  ;;  %v4705_v32 = vld [vmem:[#allocation11 + $0x68] sm:$0xff]  }
 0x24c   :  { %3448 = vmatprep.subr.bf16.mxu0 %v4643_v33  ;;  %v4706_v33 = vld [vmem:[#allocation11 + $0x28] sm:$0xff]  }
 0x24d   :  { %3488 = vmatpush2.bf16.msra.mxu1 %v4686_v42 }
 0x24e   :  { %3489 = vmatprep.subr.bf16.mxu1 %v4691_v44 }
 0x24f   :  { %3449 = vmatpush2.bf16.msra.mxu0 %v4641_v36  ;;  %v4709_v36 = vld [vmem:[#allocation11 + $0x58] sm:$0xff]  }
 0x250   :  { %3450 = vmatprep.subr.bf16.mxu0 %v4646_v38  ;;  %v4710_v38 = vld [vmem:[#allocation11 + $0x18] sm:$0xff]  }
 0x251   :  { %3490 = vmatpush2.bf16.msra.mxu1 %v4689_v49 }
 0x252   :  { %3491 = vmatprep.subr.bf16.mxu1 %v4694_v59 }
 0x253   :  { %3451 = vmatpush2.bf16.msra.mxu0 %v4644_v57  ;;  %v1399_v57 = vrot.slane %v5047_v46, %v257_v15 }
 0x254   :  { %3452 = vmatprep.subr.bf16.mxu0 %v4649_v41 }
 0x255   :  { %3492 = vmatpush2.bf16.msra.mxu1 %v4692_v61 }
 0x256   :  { %3493 = vmatprep.subr.bf16.mxu1 %v4697_v3  ;;  %v4716_v3 = vld [vmem:[#allocation11] sm:$0xff]  }
 0x257   :  { %3453 = vmatpush2.bf16.msra.mxu0 %v4647_v47 }
 0x258   :  { %3454 = vmatprep.subr.bf16.mxu0 %v4652_v48 }
 0x259   :  { %3494 = vmatpush2.bf16.msra.mxu1 %v4695_v11 }
 0x25a   :  { %3495 = vmatprep.subr.bf16.mxu1 %v4700_v7 }
 0x25b   :  { %3455 = vmatpush2.bf16.msra.mxu0 %v4650_v23 }
 0x25c   :  { %4182 = vmatprep.subr.bf16.mxu0 %v4701_v28 }
 0x25d   :  { %3496 = vmatpush2.bf16.msra.mxu1 %v4698_v6 }
 0x25e   :  { %v2800_v54 = vpop.f32.mrf.mxu0 }
 0x25f   :  { %v2801_v56 = vadd.f32 %v2800_v54, %v2760_v26  ;;  %v2841_v58 = vpop.f32.mrf.mxu1 }
 0x260   :  { %v2802_v60 = vpop.f32.mrf.mxu0 }
 0x261   :  { %v2842_v62 = vadd.f32 %v2841_v58, %v2801_v56  ;;  %v2803_v63 = vadd.f32 %v2802_v60, %v2762_v55  ;;  %v2843_v0 = vpop.f32.mrf.mxu1 }
 0x262   :  { %v2804_v1 = vpop.f32.mrf.mxu0 }
 0x263   :  { %vm3012_vm8 = vcmp.gt.f32.partialorder %v2842_v62, 0.0  ;;  %v3016_v45 = vmul.f32 0.2, %v2842_v62  ;;  %v2844_v43 = vadd.f32 %v2843_v0, %v2803_v63  ;;  %v2845_v2 = vpop.f32.mrf.mxu1  ;;  %v4713_v0 = vld [vmem:[#allocation11 + $0x48] sm:$0xff]  }
 0x264   :  { %v2805_v40 = vpop.f32.mrf.mxu0  ;;  %v4715_v2 = vld [vmem:[#allocation11 + $0x40] sm:$0xff]  }
 0x265   :  { %vm3013_vm9 = vcmp.gt.f32.partialorder %v2844_v43, 0.0  ;;  %v3017_v22 = vmul.f32 0.2, %v2844_v43  ;;  %v2846_v4 = vpop.f32.mrf.mxu1  ;;  %v3020_v5 = vsel %vm3012_vm8, %v2842_v62, %v3016_v45  ;;  %v4712_v62 = vld [vmem:[#allocation11 + $0x10] sm:$0xff]   ;;  %v4714_v45 = vld [vmem:[#allocation11 + $0x8] sm:$0xff]  }
 0x266   :  { %v3024_v17 = vpack.c.bf16 %v3020_v5, %v3020_v5  ;;  %v3092_v40 = vld [vmem:[%s5080_s6] sm:$0x3] }
 0x267   :  { %v3021_v8 = vsel %vm3013_vm9, %v2844_v43, %v3017_v22  ;;  %v3097_v11 = vrot.slane %v3092_v40, %v4975_v10  ;;  %v3101_v22 = vrot.slane %v3092_v40, %v4981_v14  ;;  %v4164_v14 = vld [vmem:[%s5082_s8] ss:$0 sm:$0xff] }
 0x268   :  { %v3025_v16 = vpack.c.bf16 %v3021_v8, %v3021_v8 }
 0x26a   :  { %3456 = vmatprep.mubr.bf16.mxu0 %v3025_v16 }
 0x26b   :  { %3457 = vmatmul.mubr.bf16.vlgmr.msra.gmra.mxu0 %v3024_v17 }
 0x26c   :  { %4183 = vmatpush3.bf16.msra.mxu0 %v4702_v29 }
 0x26d   :  { %4184 = vmatprep.subr.bf16.mxu0 %v4703_v30 }
 0x270   :  { %4185 = vmatpush3.bf16.msra.mxu0 %v4704_v31 }
 0x271   :  { %4186 = vmatprep.subr.bf16.mxu0 %v4705_v32 }
 0x274   :  { %4187 = vmatpush3.bf16.msra.mxu0 %v4706_v33 }
 0x275   :  { %4188 = vmatprep.subr.bf16.mxu0 %v4707_v34 }
 0x278   :  { %4189 = vmatpush3.bf16.msra.mxu0 %v4708_v35 }
 0x279   :  { %4190 = vmatprep.subr.bf16.mxu0 %v4709_v36 }
 0x27c   :  { %4191 = vmatpush3.bf16.msra.mxu0 %v4710_v38 }
 0x27d   :  { %4192 = vmatprep.subr.bf16.mxu0 %v4711_v37 }
 0x280   :  { %4193 = vmatpush3.bf16.msra.mxu0 %v4712_v62 }
 0x281   :  { %4194 = vmatprep.subr.bf16.mxu0 %v4713_v0 }
 0x284   :  { %4195 = vmatpush3.bf16.msra.mxu0 %v4714_v45 }
 0x285   :  { %4196 = vmatprep.subr.bf16.mxu0 %v4715_v2 }
 0x288   :  { %4197 = vmatpush3.bf16.msra.mxu0 %v4716_v3 }
 0x29e   :  { %v2882_v18 = vpop.f32.mrf.mxu0 }
 0x29f   :  { %v2923_v19 = vpop.f32.mrf.mxu1  ;;  %v2883_v41 = vadd.f32 %v2882_v18, %v1395_v39 }
 0x2a0   :  { %v2884_v20 = vpop.f32.mrf.mxu0 }
 0x2a1   :  { %v2925_v21 = vpop.f32.mrf.mxu1  ;;  %v2885_v42 = vadd.f32 %v2884_v20, %v1399_v57  ;;  %v2924_v44 = vadd.f32 %v2923_v19, %v2883_v41 }
 0x2a2   :  { %v2886_v13 = vpop.f32.mrf.mxu0 }
 0x2a3   :  { %v2927_v53 = vpop.f32.mrf.mxu1  ;;  %v2926_v48 = vadd.f32 %v2925_v21, %v2885_v42 }
 0x2a4   :  { %v2887_v25 = vpop.f32.mrf.mxu0 }
 0x2a5   :  { %v2928_v27 = vpop.f32.mrf.mxu1 }
 0x2de   :  { %v2964_v47 = vpop.f32.mrf.mxu0 }
 0x2df   :  { %v2965_v49 = vadd.f32 %v2964_v47, %v2924_v44  ;;  %v3005_v24 = vpop.f32.mrf.mxu1 }
 0x2e0   :  { %v2966_v50 = vpop.f32.mrf.mxu0 }
 0x2e1   :  { %v3006_v23 = vadd.f32 %v3005_v24, %v2965_v49  ;;  %v2967_v51 = vadd.f32 %v2966_v50, %v2926_v48  ;;  %v3007_v52 = vpop.f32.mrf.mxu1 }
 0x2e2   :  { %v2968_v26 = vpop.f32.mrf.mxu0 }
 0x2e3   :  { %vm3014_vm10 = vcmp.gt.f32.partialorder %v3006_v23, 0.0  ;;  %v3018_v54 = vmul.f32 0.2, %v3006_v23  ;;  %v3008_v55 = vadd.f32 %v3007_v52, %v2967_v51  ;;  %v3009_v12 = vpop.f32.mrf.mxu1 }
 0x2e4   :  { %v2969_v56 = vpop.f32.mrf.mxu0 }
 0x2e5   :  { %vm3015_vm11 = vcmp.gt.f32.partialorder %v3008_v55, 0.0  ;;  %v3019_v9 = vmul.f32 0.2, %v3008_v55  ;;  %v3010_v15 = vpop.f32.mrf.mxu1  ;;  %v3022_v46 = vsel %vm3014_vm10, %v3006_v23, %v3018_v54 }
 0x2e6   :  { %v3026_v60 = vpack.c.bf16 %v3022_v46, %v3022_v46 }
 0x2e7   :  { %v3023_v58 = vsel %vm3015_vm11, %v3008_v55, %v3019_v9 }
 0x2e8   :  { %v3027_v59 = vpack.c.bf16 %v3023_v58, %v3023_v58 }
 0x2ea   :  { %3497 = vmatprep.mubr.bf16.mxu1 %v3027_v59 }
 0x2eb   :  { %3498 = vmatmul.mubr.bf16.vlgmr.msra.gmra.mxu1 %v3026_v60 }
 0x32b   :  { %v3458_v61 = vpop.f32.mrf.mxu0 }
 0x32c   :  { %v3459_v4 = vadd.f32 %v3458_v61, %v3097_v11 }
 0x32d   :  { %v3460_v63 = vpop.f32.mrf.mxu0 }
 0x32e   :  { %v3461_v6 = vadd.f32 %v3460_v63, %v3101_v22 }
 0x32f   :  { %v3462_v1 = vpop.f32.mrf.mxu0 }
 0x331   :  { %v3463_v43 = vpop.f32.mrf.mxu0 }
 0x3ab   :  { %v3499_v5 = vpop.f32.mrf.mxu1 }
 0x3ac   :  { %v3500_v7 = vadd.f32 %v3499_v5, %v3459_v4 }
 0x3ad   :  { %v3501_v8 = vpop.f32.mrf.mxu1 }
 0x3ae   :  { %vm3506_vm12 = vcmp.gt.f32.partialorder %v3500_v7, 0.0  ;;  %v3508_v16 = vmul.f32 0.2, %v3500_v7  ;;  %v3502_v17 = vadd.f32 %v3501_v8, %v3461_v6 }
 0x3af   :  { %v3503_v18 = vpop.f32.mrf.mxu1 }
 0x3b0   :  { %vm3507_vm13 = vcmp.gt.f32.partialorder %v3502_v17, 0.0  ;;  %v3509_v19 = vmul.f32 0.2, %v3502_v17  ;;  %v3510_v20 = vsel %vm3506_vm12, %v3500_v7, %v3508_v16 }
 0x3b1   :  { %v3504_v21 = vpop.f32.mrf.mxu1  ;;  %v3512_v25 = vpack.c.bf16 %v3510_v20, %v3510_v20 }
 0x3b2   :  { %v3511_v13 = vsel %vm3507_vm13, %v3502_v17, %v3509_v19 }
 0x3b3   :  { %v3513_v53 = vpack.c.bf16 %v3511_v13, %v3511_v13 }
 0x3b5   :  { %3681 = vmatprep.mubr.bf16.mxu0 %v3513_v53 }
 0x3b6   :  { %3682 = vmatmul.mubr.bf16.vlgmr.msra.gmra.mxu0 %v3512_v25 }
 0x476   :  { %v4198_v10 = vpop.f32.mrf.mxu0 }
 0x478   :  { %v4199_v27 = vpop.f32.mrf.mxu0 }
 0x479   :  { %v4200_v28 = vadd.f32 %v4199_v27, %v4198_v10 }
 0x47a   :  { %v4201_v29 = vpop.f32.mrf.mxu0 }
 0x47b   :  { %v3684_v30 = vadd.f32 %v4200_v28, %v4164_v14 }
 0x47c   :  { %v4202_v31 = vpop.f32.mrf.mxu0 }
 0x47d   :  { %v4181_v32 = vmul.f32 -1.442695, %v3684_v30 }
 0x47f   :  { %4717 = vpow2.f32 %v4181_v32 }
 0x48c   :  { %v4718_v33 = vpop.eup %4717 }
 0x48d   :  { %v3692_v34 = vadd.f32 1.0, %v4718_v33 }
 0x48f   :  { %4719 = vrcp.f32 %v3692_v34 }
 0x49c   :  { %v4720_v35 = vpop.eup %4719 }
 0x49d   :  { %3695 = vst [vmem:[#allocation13] sm:$0xff] %v4720_v35 }
 0x49e   :  { %4852 = shalt.err (!%p4849_p6)
}
 0x49f   :  { %3705 = dma.vmem_to_hbm [thread:$0]  %s3703_s25, 128, %s5083_s9, [#allocation4]  }
 0x4a0   :  { %4869 = dma.done.wait [#allocation4], 128  }
 0x4a1   :  { %4870 = vsyncadd [#allocation4], 4294967168 }
 0x4a2   :  { %3709 = vsyncpa [#allocation3], 1 }
 0x4a3   :  { %3710 = vsyncpa [#allocation6], 1 }
 0x4a4   :  { %3711 = vsyncpa [#allocation9], 1 }
 0x4a5   :  { %3712 = vsyncpa [#allocation12], 1 }
 0x4a6   :  { %3713 = vsyncpa [#allocation4], 1 }

</bundles_post_ra>
